<compile_context>
chip_gen: v5e
topology: v5e:2x2
jax: 0.10.0
libtpu: 0.0.40
codegen_flags: <defaults>
</compile_context>

<pallas_src>
import jax
import jax.numpy as jnp
from jax.experimental import pallas as pl
from jax.experimental.pallas import tpu as pltpu

C = 3          # in/out channels of every conv
NUM_MIX = 5    # 4 raw convs + 1 folded (W_eff) channel mix
LANES = 128    # lane width of a vreg
SUBLANES = 8


def _fused_1x1_kernel(w_ref, c_ref, x_ref, o_ref):
    # w_ref: SMEM (NUM_MIX*C*C,) f32, flattened [mix, out_c, in_c]; mix index 4 == W_eff.
    # c_ref: SMEM (C,) f32, folded per-output-channel constant.
    # x_ref / o_ref: VMEM (1, C, TILE_ROWS, 128) f32.
    x0 = x_ref[0, 0]
    x1 = x_ref[0, 1]
    x2 = x_ref[0, 2]

    for oc in range(C):
        def mix(k, oc=oc):
            base = k * C * C + oc * C
            return w_ref[base] * x0 + w_ref[base + 1] * x1 + w_ref[base + 2] * x2

        # t6 = a1*a2 - a3*a4 + lin + c, with <=3 live full-tile temporaries.
        r = mix(0) * mix(1)
        r = r - mix(2) * mix(3)
        r = r + mix(4) + c_ref[oc]
        o_ref[0, oc] = r


def _num_tensorcores():
    """Best-effort TensorCore count of the local chip (v7x: 2, v5e/v6e: 1)."""
    try:
        info = pltpu.get_tpu_info()
        for name in ("num_cores", "core_count", "num_tensorcores", "tensorcore_count"):
            v = getattr(info, name, None)
            if isinstance(v, int) and v > 0:
                return v
    except Exception:
        pass
    try:
        kind = jax.local_devices()[0].device_kind.lower()
        if "v7" in kind or "v4" in kind or "v5p" in kind:
            return 2
    except Exception:
        pass
    return 1


def _round_up(v, m):
    return -(-v // m) * m


def _choose_tile_rows(rows, num_cores):
    """Sublane tile size (multiple of 8): as big as possible, no pointless splits."""
    max_tile = 1024                         # (1024,128) f32 x 3 ch = 1.5 MiB per block
    cores = max(1, num_cores)
    if rows <= max_tile * cores:
        # One block per TensorCore; on 1-TC chips this is a single grid step.
        return max(SUBLANES, _round_up(-(-rows // cores), SUBLANES))
    steps = -(-rows // max_tile)
    steps = _round_up(steps, cores)         # even split across TensorCores (v7x)
    return max(SUBLANES, _round_up(-(-rows // steps), SUBLANES))


def fused_model(x_nchw, weights, biases):
    """x_nchw: (N, 3, H, W); weights: (5, 3, 3); biases: (5, 3)."""
    n, c, h, w = x_nchw.shape
    assert c == C
    p = h * w

    x = x_nchw.astype(jnp.float32).reshape(n, c, p)         # contiguous -> free reshape

    # Pad the pixel axis only to an (8,128) tile multiple (no-op for typical shapes).
    p_pad = _round_up(p, SUBLANES * LANES)
    if p_pad != p:
        x = jnp.pad(x, ((0, 0), (0, 0), (0, p_pad - p)))
    rows = p_pad // LANES
    x = x.reshape(n, c, rows, LANES)

    tile_rows = _choose_tile_rows(rows, _num_tensorcores())
    row_steps = pl.cdiv(rows, tile_rows)    # partial last block handled by Pallas

    # Host-side algebraic fold of the biases and the 5th conv (see header comment).
    wf = weights.astype(jnp.float32)                        # (5, 3, 3)
    bf = biases.astype(jnp.float32)                         # (5, 3)
    w_eff = (bf[1][:, None] * wf[0] + bf[0][:, None] * wf[1]
             - bf[3][:, None] * wf[2] - bf[2][:, None] * wf[3] + wf[4])
    c_eff = bf[0] * bf[1] - bf[2] * bf[3] + bf[4]
    w_all = jnp.concatenate([wf[:4], w_eff[None]], axis=0).reshape(-1)   # (45,)

    flops = 90 * n * p                      # 30 VPU ops per (pixel, output channel) x 3
    bytes_accessed = 2 * n * C * p_pad * 4  # one read + one write of the tensor

    out = pl.pallas_call(
        _fused_1x1_kernel,
        out_shape=jax.ShapeDtypeStruct((n, c, rows, LANES), jnp.float32),
        grid=(n, row_steps),
        in_specs=[
            pl.BlockSpec(memory_space=pltpu.MemorySpace.SMEM),           # folded weights
            pl.BlockSpec(memory_space=pltpu.MemorySpace.SMEM),           # folded constants
            pl.BlockSpec((1, c, tile_rows, LANES), lambda b, i: (b, 0, i, 0)),
        ],
        out_specs=pl.BlockSpec((1, c, tile_rows, LANES), lambda b, i: (b, 0, i, 0)),
        compiler_params=pltpu.CompilerParams(
            dimension_semantics=("parallel", "parallel"),
            vmem_limit_bytes=32 * 1024 * 1024),
        cost_estimate=pl.CostEstimate(flops=flops, transcendentals=0,
                                      bytes_accessed=bytes_accessed),
    )(w_all, c_eff, x)

    out = out.reshape(n, c, p_pad)
    if p_pad != p:
        out = out[:, :, :p]
    return out.reshape(n, c, h, w)


def _reference(x_nchw, weights, biases):
    def conv1x1(x, W, b):
        return jnp.einsum("oi,nihw->nohw", W, x) + b[None, :, None, None]
    t = [conv1x1(x_nchw, weights[i], biases[i]) for i in range(NUM_MIX)]
    return t[0] * t[1] - t[2] * t[3] + t[4]


if __name__ == "__main__":
    key = jax.random.PRNGKey(0)
    kx, kw, kb = jax.random.split(key, 3)

    # Shape from the original module: (1, 3, 128, 64).
    x = jax.random.normal(kx, (1, C, 128, 64), dtype=jnp.float32)

    # Deterministic parameter init (PyTorch-like uniform in [-1/sqrt(fan_in), +...]).
    bound = 1.0 / jnp.sqrt(jnp.float32(C))
    weights = jax.random.uniform(kw, (NUM_MIX, C, C), jnp.float32, -bound, bound)
    biases = jax.random.uniform(kb, (NUM_MIX, C), jnp.float32, -bound, bound)

    out = fused_model(x, weights, biases)
    out = jax.block_until_ready(out)

    ref = _reference(x, weights, biases)
    assert out.shape == ref.shape == (1, C, 128, 64)
    # Slightly looser tolerance: the host-side bias/conv5 fold reassociates the math.
    assert jnp.allclose(out, ref, atol=1e-4, rtol=1e-4)

    print("KERNEL_OK")
</pallas_src>

<mosaic_0001>
module attributes {stable_mosaic.version = 11 : i64} {
  func.func @_fused_1x1_kernel(%arg0: i32, %arg1: i32, %arg2: memref<45xf32, #tpu.memory_space<smem>>, %arg3: memref<3xf32, #tpu.memory_space<smem>>, %arg4: memref<1x3x64x128xf32, #tpu.memory_space<vmem>>, %arg5: memref<1x3x64x128xf32, #tpu.memory_space<vmem>>) attributes {dimension_semantics = [#tpu.dimension_semantics<parallel>, #tpu.dimension_semantics<parallel>], iteration_bounds = array<i64: 1, 1>, scalar_prefetch = 0 : i64, scratch_operands = 0 : i64, tpu.core_type = #tpu.core_type<tc>, window_params = [{transform_indices = @transform_0, window_bounds = array<i64: 45>}, {transform_indices = @transform_1, window_bounds = array<i64: 3>}, {transform_indices = @transform_2, window_bounds = array<i64: 1, 3, 64, 128>}, {transform_indices = @transform_3, window_bounds = array<i64: 1, 3, 64, 128>}]} {
    %c0 = arith.constant 0 : index
    %c0_0 = arith.constant 0 : index
    %c0_1 = arith.constant 0 : index
    %c0_2 = arith.constant 0 : index
    %0 = vector.load %arg4[%c0, %c0_0, %c0_1, %c0_2] : memref<1x3x64x128xf32, #tpu.memory_space<vmem>>, vector<1x1x64x128xf32>
    %1 = vector.shape_cast %0 : vector<1x1x64x128xf32> to vector<64x128xf32>
    %c0_3 = arith.constant 0 : index
    %c1 = arith.constant 1 : index
    %c0_4 = arith.constant 0 : index
    %c0_5 = arith.constant 0 : index
    %2 = vector.load %arg4[%c0_3, %c1, %c0_4, %c0_5] : memref<1x3x64x128xf32, #tpu.memory_space<vmem>>, vector<1x1x64x128xf32>
    %3 = vector.shape_cast %2 : vector<1x1x64x128xf32> to vector<64x128xf32>
    %c0_6 = arith.constant 0 : index
    %c2 = arith.constant 2 : index
    %c0_7 = arith.constant 0 : index
    %c0_8 = arith.constant 0 : index
    %4 = vector.load %arg4[%c0_6, %c2, %c0_7, %c0_8] : memref<1x3x64x128xf32, #tpu.memory_space<vmem>>, vector<1x1x64x128xf32>
    %5 = vector.shape_cast %4 : vector<1x1x64x128xf32> to vector<64x128xf32>
    %c0_9 = arith.constant 0 : index
    %6 = memref.load %arg2[%c0_9] : memref<45xf32, #tpu.memory_space<smem>>
    %7 = vector.broadcast %6 : f32 to vector<64x128xf32>
    %8 = arith.mulf %7, %1 : vector<64x128xf32>
    %c1_10 = arith.constant 1 : index
    %9 = memref.load %arg2[%c1_10] : memref<45xf32, #tpu.memory_space<smem>>
    %10 = vector.broadcast %9 : f32 to vector<64x128xf32>
    %11 = arith.mulf %10, %3 : vector<64x128xf32>
    %12 = arith.addf %8, %11 : vector<64x128xf32>
    %c2_11 = arith.constant 2 : index
    %13 = memref.load %arg2[%c2_11] : memref<45xf32, #tpu.memory_space<smem>>
    %14 = vector.broadcast %13 : f32 to vector<64x128xf32>
    %15 = arith.mulf %14, %5 : vector<64x128xf32>
    %16 = arith.addf %12, %15 : vector<64x128xf32>
    %c9 = arith.constant 9 : index
    %17 = memref.load %arg2[%c9] : memref<45xf32, #tpu.memory_space<smem>>
    %18 = vector.broadcast %17 : f32 to vector<64x128xf32>
    %19 = arith.mulf %18, %1 : vector<64x128xf32>
    %c10 = arith.constant 10 : index
    %20 = memref.load %arg2[%c10] : memref<45xf32, #tpu.memory_space<smem>>
    %21 = vector.broadcast %20 : f32 to vector<64x128xf32>
    %22 = arith.mulf %21, %3 : vector<64x128xf32>
    %23 = arith.addf %19, %22 : vector<64x128xf32>
    %c11 = arith.constant 11 : index
    %24 = memref.load %arg2[%c11] : memref<45xf32, #tpu.memory_space<smem>>
    %25 = vector.broadcast %24 : f32 to vector<64x128xf32>
    %26 = arith.mulf %25, %5 : vector<64x128xf32>
    %27 = arith.addf %23, %26 : vector<64x128xf32>
    %28 = arith.mulf %16, %27 : vector<64x128xf32>
    %c18 = arith.constant 18 : index
    %29 = memref.load %arg2[%c18] : memref<45xf32, #tpu.memory_space<smem>>
    %30 = vector.broadcast %29 : f32 to vector<64x128xf32>
    %31 = arith.mulf %30, %1 : vector<64x128xf32>
    %c19 = arith.constant 19 : index
    %32 = memref.load %arg2[%c19] : memref<45xf32, #tpu.memory_space<smem>>
    %33 = vector.broadcast %32 : f32 to vector<64x128xf32>
    %34 = arith.mulf %33, %3 : vector<64x128xf32>
    %35 = arith.addf %31, %34 : vector<64x128xf32>
    %c20 = arith.constant 20 : index
    %36 = memref.load %arg2[%c20] : memref<45xf32, #tpu.memory_space<smem>>
    %37 = vector.broadcast %36 : f32 to vector<64x128xf32>
    %38 = arith.mulf %37, %5 : vector<64x128xf32>
    %39 = arith.addf %35, %38 : vector<64x128xf32>
    %c27 = arith.constant 27 : index
    %40 = memref.load %arg2[%c27] : memref<45xf32, #tpu.memory_space<smem>>
    %41 = vector.broadcast %40 : f32 to vector<64x128xf32>
    %42 = arith.mulf %41, %1 : vector<64x128xf32>
    %c28 = arith.constant 28 : index
    %43 = memref.load %arg2[%c28] : memref<45xf32, #tpu.memory_space<smem>>
    %44 = vector.broadcast %43 : f32 to vector<64x128xf32>
    %45 = arith.mulf %44, %3 : vector<64x128xf32>
    %46 = arith.addf %42, %45 : vector<64x128xf32>
    %c29 = arith.constant 29 : index
    %47 = memref.load %arg2[%c29] : memref<45xf32, #tpu.memory_space<smem>>
    %48 = vector.broadcast %47 : f32 to vector<64x128xf32>
    %49 = arith.mulf %48, %5 : vector<64x128xf32>
    %50 = arith.addf %46, %49 : vector<64x128xf32>
    %51 = arith.mulf %39, %50 : vector<64x128xf32>
    %52 = arith.subf %28, %51 : vector<64x128xf32>
    %c36 = arith.constant 36 : index
    %53 = memref.load %arg2[%c36] : memref<45xf32, #tpu.memory_space<smem>>
    %54 = vector.broadcast %53 : f32 to vector<64x128xf32>
    %55 = arith.mulf %54, %1 : vector<64x128xf32>
    %c37 = arith.constant 37 : index
    %56 = memref.load %arg2[%c37] : memref<45xf32, #tpu.memory_space<smem>>
    %57 = vector.broadcast %56 : f32 to vector<64x128xf32>
    %58 = arith.mulf %57, %3 : vector<64x128xf32>
    %59 = arith.addf %55, %58 : vector<64x128xf32>
    %c38 = arith.constant 38 : index
    %60 = memref.load %arg2[%c38] : memref<45xf32, #tpu.memory_space<smem>>
    %61 = vector.broadcast %60 : f32 to vector<64x128xf32>
    %62 = arith.mulf %61, %5 : vector<64x128xf32>
    %63 = arith.addf %59, %62 : vector<64x128xf32>
    %64 = arith.addf %52, %63 : vector<64x128xf32>
    %c0_12 = arith.constant 0 : index
    %65 = memref.load %arg3[%c0_12] : memref<3xf32, #tpu.memory_space<smem>>
    %66 = vector.broadcast %65 : f32 to vector<64x128xf32>
    %67 = arith.addf %64, %66 : vector<64x128xf32>
    %c0_13 = arith.constant 0 : index
    %c0_14 = arith.constant 0 : index
    %c0_15 = arith.constant 0 : index
    %c0_16 = arith.constant 0 : index
    %68 = vector.load %arg5[%c0_13, %c0_14, %c0_15, %c0_16] : memref<1x3x64x128xf32, #tpu.memory_space<vmem>>, vector<1x1x64x128xf32>
    %69 = vector.shape_cast %68 : vector<1x1x64x128xf32> to vector<64x128xf32>
    %70 = vector.shape_cast %67 : vector<64x128xf32> to vector<1x1x64x128xf32>
    tpu.vector_store %arg5[%c0_13, %c0_14, %c0_15, %c0_16], %70 {strides = array<i32>} : memref<1x3x64x128xf32, #tpu.memory_space<vmem>>, vector<1x1x64x128xf32>,
    %c3 = arith.constant 3 : index
    %71 = memref.load %arg2[%c3] : memref<45xf32, #tpu.memory_space<smem>>
    %72 = vector.broadcast %71 : f32 to vector<64x128xf32>
    %73 = arith.mulf %72, %1 : vector<64x128xf32>
    %c4 = arith.constant 4 : index
    %74 = memref.load %arg2[%c4] : memref<45xf32, #tpu.memory_space<smem>>
    %75 = vector.broadcast %74 : f32 to vector<64x128xf32>
    %76 = arith.mulf %75, %3 : vector<64x128xf32>
    %77 = arith.addf %73, %76 : vector<64x128xf32>
    %c5 = arith.constant 5 : index
    %78 = memref.load %arg2[%c5] : memref<45xf32, #tpu.memory_space<smem>>
    %79 = vector.broadcast %78 : f32 to vector<64x128xf32>
    %80 = arith.mulf %79, %5 : vector<64x128xf32>
    %81 = arith.addf %77, %80 : vector<64x128xf32>
    %c12 = arith.constant 12 : index
    %82 = memref.load %arg2[%c12] : memref<45xf32, #tpu.memory_space<smem>>
    %83 = vector.broadcast %82 : f32 to vector<64x128xf32>
    %84 = arith.mulf %83, %1 : vector<64x128xf32>
    %c13 = arith.constant 13 : index
    %85 = memref.load %arg2[%c13] : memref<45xf32, #tpu.memory_space<smem>>
    %86 = vector.broadcast %85 : f32 to vector<64x128xf32>
    %87 = arith.mulf %86, %3 : vector<64x128xf32>
    %88 = arith.addf %84, %87 : vector<64x128xf32>
    %c14 = arith.constant 14 : index
    %89 = memref.load %arg2[%c14] : memref<45xf32, #tpu.memory_space<smem>>
    %90 = vector.broadcast %89 : f32 to vector<64x128xf32>
    %91 = arith.mulf %90, %5 : vector<64x128xf32>
    %92 = arith.addf %88, %91 : vector<64x128xf32>
    %93 = arith.mulf %81, %92 : vector<64x128xf32>
    %c21 = arith.constant 21 : index
    %94 = memref.load %arg2[%c21] : memref<45xf32, #tpu.memory_space<smem>>
    %95 = vector.broadcast %94 : f32 to vector<64x128xf32>
    %96 = arith.mulf %95, %1 : vector<64x128xf32>
    %c22 = arith.constant 22 : index
    %97 = memref.load %arg2[%c22] : memref<45xf32, #tpu.memory_space<smem>>
    %98 = vector.broadcast %97 : f32 to vector<64x128xf32>
    %99 = arith.mulf %98, %3 : vector<64x128xf32>
    %100 = arith.addf %96, %99 : vector<64x128xf32>
    %c23 = arith.constant 23 : index
    %101 = memref.load %arg2[%c23] : memref<45xf32, #tpu.memory_space<smem>>
    %102 = vector.broadcast %101 : f32 to vector<64x128xf32>
    %103 = arith.mulf %102, %5 : vector<64x128xf32>
    %104 = arith.addf %100, %103 : vector<64x128xf32>
    %c30 = arith.constant 30 : index
    %105 = memref.load %arg2[%c30] : memref<45xf32, #tpu.memory_space<smem>>
    %106 = vector.broadcast %105 : f32 to vector<64x128xf32>
    %107 = arith.mulf %106, %1 : vector<64x128xf32>
    %c31 = arith.constant 31 : index
    %108 = memref.load %arg2[%c31] : memref<45xf32, #tpu.memory_space<smem>>
    %109 = vector.broadcast %108 : f32 to vector<64x128xf32>
    %110 = arith.mulf %109, %3 : vector<64x128xf32>
    %111 = arith.addf %107, %110 : vector<64x128xf32>
    %c32 = arith.constant 32 : index
    %112 = memref.load %arg2[%c32] : memref<45xf32, #tpu.memory_space<smem>>
    %113 = vector.broadcast %112 : f32 to vector<64x128xf32>
    %114 = arith.mulf %113, %5 : vector<64x128xf32>
    %115 = arith.addf %111, %114 : vector<64x128xf32>
    %116 = arith.mulf %104, %115 : vector<64x128xf32>
    %117 = arith.subf %93, %116 : vector<64x128xf32>
    %c39 = arith.constant 39 : index
    %118 = memref.load %arg2[%c39] : memref<45xf32, #tpu.memory_space<smem>>
    %119 = vector.broadcast %118 : f32 to vector<64x128xf32>
    %120 = arith.mulf %119, %1 : vector<64x128xf32>
    %c40 = arith.constant 40 : index
    %121 = memref.load %arg2[%c40] : memref<45xf32, #tpu.memory_space<smem>>
    %122 = vector.broadcast %121 : f32 to vector<64x128xf32>
    %123 = arith.mulf %122, %3 : vector<64x128xf32>
    %124 = arith.addf %120, %123 : vector<64x128xf32>
    %c41 = arith.constant 41 : index
    %125 = memref.load %arg2[%c41] : memref<45xf32, #tpu.memory_space<smem>>
    %126 = vector.broadcast %125 : f32 to vector<64x128xf32>
    %127 = arith.mulf %126, %5 : vector<64x128xf32>
    %128 = arith.addf %124, %127 : vector<64x128xf32>
    %129 = arith.addf %117, %128 : vector<64x128xf32>
    %c1_17 = arith.constant 1 : index
    %130 = memref.load %arg3[%c1_17] : memref<3xf32, #tpu.memory_space<smem>>
    %131 = vector.broadcast %130 : f32 to vector<64x128xf32>
    %132 = arith.addf %129, %131 : vector<64x128xf32>
    %c0_18 = arith.constant 0 : index
    %c1_19 = arith.constant 1 : index
    %c0_20 = arith.constant 0 : index
    %c0_21 = arith.constant 0 : index
    %133 = vector.load %arg5[%c0_18, %c1_19, %c0_20, %c0_21] : memref<1x3x64x128xf32, #tpu.memory_space<vmem>>, vector<1x1x64x128xf32>
    %134 = vector.shape_cast %133 : vector<1x1x64x128xf32> to vector<64x128xf32>
    %135 = vector.shape_cast %132 : vector<64x128xf32> to vector<1x1x64x128xf32>
    tpu.vector_store %arg5[%c0_18, %c1_19, %c0_20, %c0_21], %135 {strides = array<i32>} : memref<1x3x64x128xf32, #tpu.memory_space<vmem>>, vector<1x1x64x128xf32>,
    %c6 = arith.constant 6 : index
    %136 = memref.load %arg2[%c6] : memref<45xf32, #tpu.memory_space<smem>>
    %137 = vector.broadcast %136 : f32 to vector<64x128xf32>
    %138 = arith.mulf %137, %1 : vector<64x128xf32>
    %c7 = arith.constant 7 : index
    %139 = memref.load %arg2[%c7] : memref<45xf32, #tpu.memory_space<smem>>
    %140 = vector.broadcast %139 : f32 to vector<64x128xf32>
    %141 = arith.mulf %140, %3 : vector<64x128xf32>
    %142 = arith.addf %138, %141 : vector<64x128xf32>
    %c8 = arith.constant 8 : index
    %143 = memref.load %arg2[%c8] : memref<45xf32, #tpu.memory_space<smem>>
    %144 = vector.broadcast %143 : f32 to vector<64x128xf32>
    %145 = arith.mulf %144, %5 : vector<64x128xf32>
    %146 = arith.addf %142, %145 : vector<64x128xf32>
    %c15 = arith.constant 15 : index
    %147 = memref.load %arg2[%c15] : memref<45xf32, #tpu.memory_space<smem>>
    %148 = vector.broadcast %147 : f32 to vector<64x128xf32>
    %149 = arith.mulf %148, %1 : vector<64x128xf32>
    %c16 = arith.constant 16 : index
    %150 = memref.load %arg2[%c16] : memref<45xf32, #tpu.memory_space<smem>>
    %151 = vector.broadcast %150 : f32 to vector<64x128xf32>
    %152 = arith.mulf %151, %3 : vector<64x128xf32>
    %153 = arith.addf %149, %152 : vector<64x128xf32>
    %c17 = arith.constant 17 : index
    %154 = memref.load %arg2[%c17] : memref<45xf32, #tpu.memory_space<smem>>
    %155 = vector.broadcast %154 : f32 to vector<64x128xf32>
    %156 = arith.mulf %155, %5 : vector<64x128xf32>
    %157 = arith.addf %153, %156 : vector<64x128xf32>
    %158 = arith.mulf %146, %157 : vector<64x128xf32>
    %c24 = arith.constant 24 : index
    %159 = memref.load %arg2[%c24] : memref<45xf32, #tpu.memory_space<smem>>
    %160 = vector.broadcast %159 : f32 to vector<64x128xf32>
    %161 = arith.mulf %160, %1 : vector<64x128xf32>
    %c25 = arith.constant 25 : index
    %162 = memref.load %arg2[%c25] : memref<45xf32, #tpu.memory_space<smem>>
    %163 = vector.broadcast %162 : f32 to vector<64x128xf32>
    %164 = arith.mulf %163, %3 : vector<64x128xf32>
    %165 = arith.addf %161, %164 : vector<64x128xf32>
    %c26 = arith.constant 26 : index
    %166 = memref.load %arg2[%c26] : memref<45xf32, #tpu.memory_space<smem>>
    %167 = vector.broadcast %166 : f32 to vector<64x128xf32>
    %168 = arith.mulf %167, %5 : vector<64x128xf32>
    %169 = arith.addf %165, %168 : vector<64x128xf32>
    %c33 = arith.constant 33 : index
    %170 = memref.load %arg2[%c33] : memref<45xf32, #tpu.memory_space<smem>>
    %171 = vector.broadcast %170 : f32 to vector<64x128xf32>
    %172 = arith.mulf %171, %1 : vector<64x128xf32>
    %c34 = arith.constant 34 : index
    %173 = memref.load %arg2[%c34] : memref<45xf32, #tpu.memory_space<smem>>
    %174 = vector.broadcast %173 : f32 to vector<64x128xf32>
    %175 = arith.mulf %174, %3 : vector<64x128xf32>
    %176 = arith.addf %172, %175 : vector<64x128xf32>
    %c35 = arith.constant 35 : index
    %177 = memref.load %arg2[%c35] : memref<45xf32, #tpu.memory_space<smem>>
    %178 = vector.broadcast %177 : f32 to vector<64x128xf32>
    %179 = arith.mulf %178, %5 : vector<64x128xf32>
    %180 = arith.addf %176, %179 : vector<64x128xf32>
    %181 = arith.mulf %169, %180 : vector<64x128xf32>
    %182 = arith.subf %158, %181 : vector<64x128xf32>
    %c42 = arith.constant 42 : index
    %183 = memref.load %arg2[%c42] : memref<45xf32, #tpu.memory_space<smem>>
    %184 = vector.broadcast %183 : f32 to vector<64x128xf32>
    %185 = arith.mulf %184, %1 : vector<64x128xf32>
    %c43 = arith.constant 43 : index
    %186 = memref.load %arg2[%c43] : memref<45xf32, #tpu.memory_space<smem>>
    %187 = vector.broadcast %186 : f32 to vector<64x128xf32>
    %188 = arith.mulf %187, %3 : vector<64x128xf32>
    %189 = arith.addf %185, %188 : vector<64x128xf32>
    %c44 = arith.constant 44 : index
    %190 = memref.load %arg2[%c44] : memref<45xf32, #tpu.memory_space<smem>>
    %191 = vector.broadcast %190 : f32 to vector<64x128xf32>
    %192 = arith.mulf %191, %5 : vector<64x128xf32>
    %193 = arith.addf %189, %192 : vector<64x128xf32>
    %194 = arith.addf %182, %193 : vector<64x128xf32>
    %c2_22 = arith.constant 2 : index
    %195 = memref.load %arg3[%c2_22] : memref<3xf32, #tpu.memory_space<smem>>
    %196 = vector.broadcast %195 : f32 to vector<64x128xf32>
    %197 = arith.addf %194, %196 : vector<64x128xf32>
    %c0_23 = arith.constant 0 : index
    %c2_24 = arith.constant 2 : index
    %c0_25 = arith.constant 0 : index
    %c0_26 = arith.constant 0 : index
    %198 = vector.load %arg5[%c0_23, %c2_24, %c0_25, %c0_26] : memref<1x3x64x128xf32, #tpu.memory_space<vmem>>, vector<1x1x64x128xf32>
    %199 = vector.shape_cast %198 : vector<1x1x64x128xf32> to vector<64x128xf32>
    %200 = vector.shape_cast %197 : vector<64x128xf32> to vector<1x1x64x128xf32>
    tpu.vector_store %arg5[%c0_23, %c2_24, %c0_25, %c0_26], %200 {strides = array<i32>} : memref<1x3x64x128xf32, #tpu.memory_space<vmem>>, vector<1x1x64x128xf32>,
    return
  }
  func.func @transform_0(%arg0: i32, %arg1: i32) -> i32 {
    %c0_i32 = arith.constant 0 : i32
    %c0_i32_0 = arith.constant 0 : i32
    return %c0_i32 : i32
  }
  func.func @transform_1(%arg0: i32, %arg1: i32) -> i32 {
    %c0_i32 = arith.constant 0 : i32
    %c0_i32_0 = arith.constant 0 : i32
    return %c0_i32 : i32
  }
  func.func @transform_2(%arg0: i32, %arg1: i32) -> (i32, i32, i32, i32) {
    %c0_i32 = arith.constant 0 : i32
    %c0_i32_0 = arith.constant 0 : i32
    %c0_i32_1 = arith.constant 0 : i32
    return %arg0, %c0_i32, %arg1, %c0_i32_0 : i32, i32, i32, i32
  }
  func.func @transform_3(%arg0: i32, %arg1: i32) -> (i32, i32, i32, i32) {
    %c0_i32 = arith.constant 0 : i32
    %c0_i32_0 = arith.constant 0 : i32
    %c0_i32_1 = arith.constant 0 : i32
    return %arg0, %c0_i32, %arg1, %c0_i32_0 : i32, i32, i32, i32
  }
}

</mosaic_0001>

<bundles_post_ra>
// kernel: tpu_custom_call.1
= control target key start
LH: loop header
LB: loop body
LE: loop exit
PB: predicated region body
PF: predicated region fallthrough
CT: control target
= control target key end

     0   :  { %8 = vsyncpa [#allocation5], 0  ;;  %s2018_s0 = inlined_call_operand.hbm [shape: f32[45], index: 0, kind: input, shape index: {}]   ;;  %s2019_s1 = inlined_call_operand.hbm [shape: f32[3], index: 1, kind: input, shape index: {}]   ;;  %s2020_s2 = inlined_call_operand.hbm [shape: f32[1,3,64,128], index: 2, kind: input, shape index: {}]   ;;  %s2021_s3 = inlined_call_operand.hbm [shape: f32[1,3,64,128], index: 3, kind: output, shape index: {}]  }
   0x1   :  { %9 = vsyncpa [#allocation7], 0 }
   0x2   :  { %10 = vsyncpa [#allocation3], 0 }
   0x3   :  { %11 = vsyncpa [#allocation4], 0  ;;  %s17_s14 = sshll.u32 %s2018_s0, 4  ;;  %s26_s17 = sshll.u32 %s2019_s1, 4  ;;  %s18_s14 = int_to_ptr.hbm [resolvable:$true] %s17_s14  ;;  %s27_s17 = int_to_ptr.hbm [resolvable:$true] %s26_s17 }
   0x4   :  { %s1101_s18 = smov [#allocation2]   ;;  %s1102_s19 = smov [#allocation6]  }
   0x5   :  { %20 = dma.hbm_to_smem %s18_s14, 16, %s1101_s18, [#allocation5]  }
   0x6   :  { %29 = dma.hbm_to_smem %s27_s17, 16, %s1102_s19, [#allocation7]  }
   0x7   :  { %s34_s22 = sshll.u32 %s2020_s2, 4  ;;  %s1103_s23 = smov [#allocation8]   ;;  %s35_s22 = int_to_ptr.hbm [resolvable:$true] %s34_s22 }
   0x8   :  { %s36_s24 = sshll.u32 %s1103_s23, 4  ;;  %s1104_s25 = smov 128   ;;  %s37_s24 = int_to_ptr.vmem [resolvable:$true] %s36_s24 }
   0x9   :  { %s1105_s0 = smov 8  }
   0xa   :  { %42 = dma.hbm_to_vmem [thread:$0]  %s35_s22, 3072, %s37_s24, [#allocation3], %s1104_s25, %s1104_s25, %s1105_s0  }
   0xb   :  { %1093 = dma.done.wait [#allocation5], 16  }
   0xc   :  { %1094 = vsyncadd [#allocation5], 4294967280 }
   0xd   :  { %1095 = dma.done.wait [#allocation7], 16  }
   0xe   :  { %1096 = vsyncadd [#allocation7], 4294967280 }
   0xf   :  { %1097 = dma.done.wait [#allocation3], 3072  }
  0x10   :  { %1098 = vsyncadd [#allocation3], 4294964224 }
  0x11   :  { %55 = sfence }
  0x12   :  { %s82_s1 = sld [smem:[#allocation2]]  ;;  %v1139_v0 = vld [vmem:[#allocation8] sm:$0xff]  ;;  %v1141_v1 = vld [vmem:[#allocation8 + $0x8] sm:$0xff]  ;;  %v1143_v2 = vld [vmem:[#allocation8 + $0x10] sm:$0xff] }
  0x13   :  { %s945_s26 = sld [smem:[#allocation2 + $0x1]]  ;;  %v1145_v3 = vld [vmem:[#allocation8 + $0x40] sm:$0xff]  ;;  %v1147_v4 = vld [vmem:[#allocation8 + $0x48] sm:$0xff]  ;;  %v1149_v5 = vld [vmem:[#allocation8 + $0x50] sm:$0xff] }
  0x14   :  { %s946_s2 = sld [smem:[#allocation2 + $0x2]]  ;;  %v1151_v6 = vld [vmem:[#allocation8 + $0x80] sm:$0xff]  ;;  %v1155_v8 = vld [vmem:[#allocation8 + $0x88] sm:$0xff]  ;;  %v1157_v9 = vld [vmem:[#allocation8 + $0x90] sm:$0xff] }
  0x15   :  { %s947_s27 = sld [smem:[#allocation2 + $0x9]] }
  0x16   :  { %s948_s28 = sld [smem:[#allocation2 + $0xa]] }
  0x17   :  { %s949_s29 = sld [smem:[#allocation2 + $0xb]] }
  0x18   :  { %v1153_v7 = vstv %s82_s1  ;;  %s950_s30 = sld [smem:[#allocation2 + $0x12]] }
  0x19   :  { %v84_v10 = vmul.f32 %v1153_v7, %v1139_v0  ;;  %v1161_v11 = vstv %s945_s26  ;;  %s951_s4 = sld [smem:[#allocation2 + $0x13]]  ;;  %v85_v12 = vmul.f32 %v1153_v7, %v1141_v1  ;;  %v1167_v13 = vmul.f32 %v1153_v7, %v1143_v2 }
  0x1a   :  { %v94_v14 = vmul.f32 %v1161_v11, %v1145_v3  ;;  %v1171_v15 = vstv %s946_s2  ;;  %s952_s5 = sld [smem:[#allocation2 + $0x14]]  ;;  %v95_v16 = vmul.f32 %v1161_v11, %v1147_v4  ;;  %v1177_v17 = vmul.f32 %v1161_v11, %v1149_v5 }
  0x1b   :  { %v112_v18 = vmul.f32 %v1171_v15, %v1151_v6  ;;  %v1181_v19 = vstv %s947_s27  ;;  %s953_s6 = sld [smem:[#allocation2 + $0x1b]]  ;;  %v113_v20 = vmul.f32 %v1171_v15, %v1155_v8  ;;  %v1187_v21 = vmul.f32 %v1171_v15, %v1157_v9 }
  0x1c   :  { %v102_v22 = vadd.f32 %v94_v14, %v84_v10  ;;  %v130_v23 = vmul.f32 %v1181_v19, %v1139_v0  ;;  %v1191_v24 = vstv %s948_s28  ;;  %s954_s7 = sld [smem:[#allocation2 + $0x1c]]  ;;  %v103_v25 = vadd.f32 %v95_v16, %v85_v12 }
  0x1d   :  { %v140_v26 = vmul.f32 %v1191_v24, %v1145_v3  ;;  %v1195_v27 = vstv %s949_s29  ;;  %s955_s8 = sld [smem:[#allocation2 + $0x1d]]  ;;  %v131_v28 = vmul.f32 %v1181_v19, %v1141_v1  ;;  %v141_v29 = vmul.f32 %v1191_v24, %v1147_v4 }
  0x1e   :  { %v120_v30 = vadd.f32 %v112_v18, %v102_v22  ;;  %v158_v31 = vmul.f32 %v1195_v27, %v1151_v6  ;;  %v1203_v32 = vstv %s950_s30  ;;  %s956_s9 = sld [smem:[#allocation2 + $0x24]]  ;;  %v121_v33 = vadd.f32 %v113_v20, %v103_v25 }
  0x1f   :  { %v148_v34 = vadd.f32 %v140_v26, %v130_v23  ;;  %v184_v35 = vmul.f32 %v1203_v32, %v1139_v0  ;;  %v1207_v36 = vstv %s951_s4  ;;  %s957_s10 = sld [smem:[#allocation2 + $0x25]]  ;;  %v149_v37 = vadd.f32 %v141_v29, %v131_v28 }
  0x20   :  { %v194_v38 = vmul.f32 %v1207_v36, %v1145_v3  ;;  %v1211_v39 = vstv %s952_s5  ;;  %s958_s11 = sld [smem:[#allocation2 + $0x26]]  ;;  %v159_v40 = vmul.f32 %v1195_v27, %v1155_v8  ;;  %v185_v41 = vmul.f32 %v1203_v32, %v1141_v1 }
  0x21   :  { %v166_v42 = vadd.f32 %v158_v31, %v148_v34  ;;  %v212_v43 = vmul.f32 %v1211_v39, %v1151_v6  ;;  %v1219_v44 = vstv %s953_s6  ;;  %s344_s12 = sld [smem:[#allocation6]]  ;;  %v195_v45 = vmul.f32 %v1207_v36, %v1147_v4 }
  0x22   :  { %v202_v46 = vadd.f32 %v194_v38, %v184_v35  ;;  %v230_v47 = vmul.f32 %v1219_v44, %v1139_v0  ;;  %v1225_v48 = vstv %s954_s7  ;;  %v167_v49 = vadd.f32 %v159_v40, %v149_v37  ;;  %s1421_s13 = sld [smem:[#allocation2 + $0x3]] }
  0x23   :  { %v174_v50 = vmul.f32 %v166_v42, %v120_v30  ;;  %v240_v51 = vmul.f32 %v1225_v48, %v1145_v3  ;;  %v1229_v52 = vstv %s955_s8  ;;  %v203_v53 = vadd.f32 %v195_v45, %v185_v41  ;;  %s1429_s14 = sld [smem:[#allocation2 + $0x4]] }
  0x24   :  { %v220_v54 = vadd.f32 %v212_v43, %v202_v46  ;;  %v258_v55 = vmul.f32 %v1229_v52, %v1151_v6  ;;  %v1233_v56 = vstv %s956_s9  ;;  %v175_v57 = vmul.f32 %v167_v49, %v121_v33  ;;  %s1439_s15 = sld [smem:[#allocation2 + $0x5]] }
  0x25   :  { %v248_v58 = vadd.f32 %v240_v51, %v230_v47  ;;  %v292_v59 = vmul.f32 %v1233_v56, %v1139_v0  ;;  %v1237_v60 = vstv %s957_s10  ;;  %v213_v61 = vmul.f32 %v1211_v39, %v1155_v8  ;;  %s1447_s16 = sld [smem:[#allocation2 + $0xc]] }
  0x26   :  { %v302_v62 = vmul.f32 %v1237_v60, %v1145_v3  ;;  %v1243_v63 = vstv %s958_s11  ;;  %v231_v10 = vmul.f32 %v1219_v44, %v1141_v1  ;;  %v241_v12 = vmul.f32 %v1225_v48, %v1147_v4  ;;  %s1453_s17 = sld [smem:[#allocation2 + $0xd]] }
  0x27   :  { %v266_v14 = vadd.f32 %v258_v55, %v248_v58  ;;  %v320_v16 = vmul.f32 %v1243_v63, %v1151_v6  ;;  %v1251_v18 = vstv %s344_s12  ;;  %v221_v20 = vadd.f32 %v213_v61, %v203_v53  ;;  %v1280_v55 = vld [vmem:[#allocation8 + $0x18] sm:$0xff]  ;;  %s1457_s18 = sld [smem:[#allocation2 + $0xe]] }
  0x28   :  { %v310_v22 = vadd.f32 %v302_v62, %v292_v59  ;;  %v249_v23 = vadd.f32 %v241_v12, %v231_v10  ;;  %v259_v25 = vmul.f32 %v1229_v52, %v1155_v8  ;;  %v293_v26 = vmul.f32 %v1233_v56, %v1141_v1  ;;  %v1282_v58 = vld [vmem:[#allocation8 + $0x58] sm:$0xff]  ;;  %s1464_s19 = sld [smem:[#allocation2 + $0x15]] }
  0x29   :  { %v274_v28 = vmul.f32 %v266_v14, %v220_v54  ;;  %v303_v29 = vmul.f32 %v1237_v60, %v1147_v4  ;;  %v321_v30 = vmul.f32 %v1243_v63, %v1155_v8  ;;  %v104_v31 = vadd.f32 %v1177_v17, %v1167_v13  ;;  %v1291_v10 = vld [vmem:[#allocation8 + $0x98] sm:$0xff]  ;;  %s1470_s20 = sld [smem:[#allocation2 + $0x16]] }
  0x2a   :  { %v328_v33 = vadd.f32 %v320_v16, %v310_v22  ;;  %v267_v34 = vadd.f32 %v259_v25, %v249_v23  ;;  %v132_v35 = vmul.f32 %v1181_v19, %v1143_v2  ;;  %v142_v37 = vmul.f32 %v1191_v24, %v1149_v5  ;;  %s1478_s21 = sld [smem:[#allocation2 + $0x17]] }
  0x2b   :  { %v282_v38 = vsub.f32 %v174_v50, %v274_v28  ;;  %v311_v40 = vadd.f32 %v303_v29, %v293_v26  ;;  %v122_v41 = vadd.f32 %v1187_v21, %v104_v31  ;;  %v160_v42 = vmul.f32 %v1195_v27, %v1157_v9  ;;  %s1484_s22 = sld [smem:[#allocation2 + $0x1e]] }
  0x2c   :  { %v275_v43 = vmul.f32 %v267_v34, %v221_v20  ;;  %v150_v45 = vadd.f32 %v142_v37, %v132_v35  ;;  %v186_v13 = vmul.f32 %v1203_v32, %v1143_v2  ;;  %v196_v17 = vmul.f32 %v1207_v36, %v1149_v5  ;;  %s1490_s23 = sld [smem:[#allocation2 + $0x1f]] }
  0x2d   :  { %v336_v46 = vadd.f32 %v328_v33, %v282_v38  ;;  %v329_v47 = vadd.f32 %v321_v30, %v311_v40  ;;  %v214_v49 = vmul.f32 %v1211_v39, %v1157_v9  ;;  %v232_v50 = vmul.f32 %v1219_v44, %v1143_v2  ;;  %s1496_s24 = sld [smem:[#allocation2 + $0x20]] }
  0x2e   :  { %v283_v21 = vsub.f32 %v175_v57, %v275_v43  ;;  %v168_v51 = vadd.f32 %v160_v42, %v150_v45  ;;  %v204_v53 = vadd.f32 %v196_v17, %v186_v13  ;;  %v242_v54 = vmul.f32 %v1225_v48, %v1149_v5  ;;  %s1504_s1 = sld [smem:[#allocation2 + $0x27]] }
  0x2f   :  { %v346_v59 = vadd.f32 %v1251_v18, %v336_v46  ;;  %v260_v61 = vmul.f32 %v1229_v52, %v1157_v9  ;;  %v294_v62 = vmul.f32 %v1233_v56, %v1143_v2  ;;  %v304_v57 = vmul.f32 %v1237_v60, %v1149_v5  ;;  %v1318_v46 = vld [vmem:[#allocation8 + $0x20] sm:$0xff]  ;;  %s1508_s26 = sld [smem:[#allocation2 + $0x28]] }
  0x30   :  { %v337_v12 = vadd.f32 %v329_v47, %v283_v21  ;;  %v176_v14 = vmul.f32 %v168_v51, %v122_v41  ;;  %v222_v16 = vadd.f32 %v214_v49, %v204_v53  ;;  %v250_v20 = vadd.f32 %v242_v54, %v232_v50  ;;  %v1320_v47 = vld [vmem:[#allocation8 + $0x60] sm:$0xff]  ;;  %s1519_s2 = sld [smem:[#allocation2 + $0x29]] }
  0x31   :  { %354 = vst [vmem:[#allocation9] sm:$0xff] %v346_v59  ;;  %v312_v22 = vadd.f32 %v304_v57, %v294_v62  ;;  %v322_v23 = vmul.f32 %v1243_v63, %v1157_v9  ;;  %v87_v25 = vmul.f32 %v1153_v7, %v1280_v55  ;;  %v97_v26 = vmul.f32 %v1161_v11, %v1282_v58  ;;  %v1326_v53 = vld [vmem:[#allocation8 + $0xa0] sm:$0xff]  ;;  %s1534_s27 = sld [smem:[#allocation6 + $0x1]] }
  0x32   :  { %v347_v28 = vadd.f32 %v1251_v18, %v337_v12  ;;  %v268_v29 = vadd.f32 %v260_v61, %v250_v20  ;;  %v115_v30 = vmul.f32 %v1171_v15, %v1291_v10  ;;  %v133_v31 = vmul.f32 %v1181_v19, %v1280_v55  ;;  %s1755_s28 = sld [smem:[#allocation2 + $0x6]] }
  0x33   :  { %v330_v33 = vadd.f32 %v322_v23, %v312_v22  ;;  %v105_v34 = vadd.f32 %v97_v26, %v87_v25  ;;  %v143_v35 = vmul.f32 %v1191_v24, %v1282_v58  ;;  %v161_v37 = vmul.f32 %v1195_v27, %v1291_v10  ;;  %s1761_s29 = sld [smem:[#allocation2 + $0x7]] }
  0x34   :  { %355 = vst [vmem:[#allocation9 + $0x8] sm:$0xff] %v347_v28  ;;  %v276_v38 = vmul.f32 %v268_v29, %v222_v16  ;;  %v187_v40 = vmul.f32 %v1203_v32, %v1280_v55  ;;  %v197_v41 = vmul.f32 %v1207_v36, %v1282_v58  ;;  %v215_v42 = vmul.f32 %v1211_v39, %v1291_v10  ;;  %s1769_s30 = sld [smem:[#allocation2 + $0x8]] }
  0x35   :  { %v123_v43 = vadd.f32 %v115_v30, %v105_v34  ;;  %v151_v45 = vadd.f32 %v143_v35, %v133_v31  ;;  %v233_v13 = vmul.f32 %v1219_v44, %v1280_v55  ;;  %v243_v17 = vmul.f32 %v1225_v48, %v1282_v58  ;;  %s1775_s4 = sld [smem:[#allocation2 + $0xf]] }
  0x36   :  { %v284_v49 = vsub.f32 %v176_v14, %v276_v38  ;;  %v205_v50 = vadd.f32 %v197_v41, %v187_v40  ;;  %v261_v21 = vmul.f32 %v1229_v52, %v1291_v10  ;;  %v295_v51 = vmul.f32 %v1233_v56, %v1280_v55  ;;  %s1781_s5 = sld [smem:[#allocation2 + $0x10]] }
  0x37   :  { %v169_v54 = vadd.f32 %v161_v37, %v151_v45  ;;  %v251_v59 = vadd.f32 %v243_v17, %v233_v13  ;;  %v305_v61 = vmul.f32 %v1237_v60, %v1282_v58  ;;  %v323_v62 = vmul.f32 %v1243_v63, %v1291_v10  ;;  %s1785_s6 = sld [smem:[#allocation2 + $0x11]] }
  0x38   :  { %v338_v57 = vadd.f32 %v330_v33, %v284_v49  ;;  %v223_v12 = vadd.f32 %v215_v42, %v205_v50  ;;  %v88_v14 = vmul.f32 %v1153_v7, %v1318_v46  ;;  %v98_v16 = vmul.f32 %v1161_v11, %v1320_v47  ;;  %v1351_v42 = vld [vmem:[#allocation8 + $0x28] sm:$0xff]  ;;  %s1792_s7 = sld [smem:[#allocation2 + $0x18]] }
  0x39   :  { %v177_v20 = vmul.f32 %v169_v54, %v123_v43  ;;  %v269_v22 = vadd.f32 %v261_v21, %v251_v59  ;;  %v313_v23 = vadd.f32 %v305_v61, %v295_v51  ;;  %v116_v25 = vmul.f32 %v1171_v15, %v1326_v53  ;;  %v1359_v49 = vld [vmem:[#allocation8 + $0x68] sm:$0xff]  ;;  %s1798_s8 = sld [smem:[#allocation2 + $0x19]] }
  0x3a   :  { %v348_v26 = vadd.f32 %v1251_v18, %v338_v57  ;;  %v106_v28 = vadd.f32 %v98_v16, %v88_v14  ;;  %v134_v29 = vmul.f32 %v1181_v19, %v1318_v46  ;;  %v144_v30 = vmul.f32 %v1191_v24, %v1320_v47  ;;  %v1365_v59 = vld [vmem:[#allocation8 + $0xa8] sm:$0xff]  ;;  %s1806_s9 = sld [smem:[#allocation2 + $0x1a]] }
  0x3b   :  { %v277_v31 = vmul.f32 %v269_v22, %v223_v12  ;;  %v331_v33 = vadd.f32 %v323_v62, %v313_v23  ;;  %v162_v34 = vmul.f32 %v1195_v27, %v1326_v53  ;;  %v188_v35 = vmul.f32 %v1203_v32, %v1318_v46  ;;  %s1812_s10 = sld [smem:[#allocation2 + $0x21]] }
  0x3c   :  { %356 = vst [vmem:[#allocation9 + $0x10] sm:$0xff] %v348_v26  ;;  %v124_v37 = vadd.f32 %v116_v25, %v106_v28  ;;  %v152_v38 = vadd.f32 %v144_v30, %v134_v29  ;;  %v198_v40 = vmul.f32 %v1207_v36, %v1320_v47  ;;  %v216_v41 = vmul.f32 %v1211_v39, %v1326_v53  ;;  %s1818_s11 = sld [smem:[#allocation2 + $0x22]] }
  0x3d   :  { %v285_v43 = vsub.f32 %v177_v20, %v277_v31  ;;  %v234_v45 = vmul.f32 %v1219_v44, %v1318_v46  ;;  %v244_v13 = vmul.f32 %v1225_v48, %v1320_v47  ;;  %v262_v17 = vmul.f32 %v1229_v52, %v1326_v53  ;;  %s1824_s12 = sld [smem:[#allocation2 + $0x23]] }
  0x3e   :  { %v170_v50 = vadd.f32 %v162_v34, %v152_v38  ;;  %v206_v21 = vadd.f32 %v198_v40, %v188_v35  ;;  %v296_v51 = vmul.f32 %v1233_v56, %v1318_v46  ;;  %v306_v54 = vmul.f32 %v1237_v60, %v1320_v47 }
  0x3f   :  { %v339_v61 = vadd.f32 %v331_v33, %v285_v43  ;;  %v252_v62 = vadd.f32 %v244_v13, %v234_v45  ;;  %v324_v57 = vmul.f32 %v1243_v63, %v1326_v53  ;;  %v89_v12 = vmul.f32 %v1153_v7, %v1351_v42  ;;  %v1392_v13 = vld [vmem:[#allocation8 + $0x30] sm:$0xff] }
  0x40   :  { %v178_v14 = vmul.f32 %v170_v50, %v124_v37  ;;  %v224_v16 = vadd.f32 %v216_v41, %v206_v21  ;;  %v314_v20 = vadd.f32 %v306_v54, %v296_v51  ;;  %v99_v22 = vmul.f32 %v1161_v11, %v1359_v49 }
  0x41   :  { %v349_v23 = vadd.f32 %v1251_v18, %v339_v61  ;;  %v270_v25 = vadd.f32 %v262_v17, %v252_v62  ;;  %v117_v26 = vmul.f32 %v1171_v15, %v1365_v59  ;;  %v135_v28 = vmul.f32 %v1181_v19, %v1351_v42  ;;  %v1394_v17 = vld [vmem:[#allocation8 + $0x70] sm:$0xff] }
  0x42   :  { %v332_v29 = vadd.f32 %v324_v57, %v314_v20  ;;  %v107_v30 = vadd.f32 %v99_v22, %v89_v12  ;;  %v145_v31 = vmul.f32 %v1191_v24, %v1359_v49  ;;  %v163_v33 = vmul.f32 %v1195_v27, %v1365_v59  ;;  %v1400_v61 = vld [vmem:[#allocation8 + $0xb0] sm:$0xff] }
  0x43   :  { %357 = vst [vmem:[#allocation9 + $0x18] sm:$0xff] %v349_v23  ;;  %v278_v34 = vmul.f32 %v270_v25, %v224_v16  ;;  %v189_v35 = vmul.f32 %v1203_v32, %v1351_v42  ;;  %v199_v37 = vmul.f32 %v1207_v36, %v1359_v49  ;;  %v217_v38 = vmul.f32 %v1211_v39, %v1365_v59 }
  0x44   :  { %v125_v40 = vadd.f32 %v117_v26, %v107_v30  ;;  %v153_v41 = vadd.f32 %v145_v31, %v135_v28  ;;  %v235_v43 = vmul.f32 %v1219_v44, %v1351_v42  ;;  %v245_v45 = vmul.f32 %v1225_v48, %v1359_v49 }
  0x45   :  { %v286_v50 = vsub.f32 %v178_v14, %v278_v34  ;;  %v207_v21 = vadd.f32 %v199_v37, %v189_v35  ;;  %v263_v51 = vmul.f32 %v1229_v52, %v1365_v59  ;;  %v297_v54 = vmul.f32 %v1233_v56, %v1351_v42 }
  0x46   :  { %v171_v62 = vadd.f32 %v163_v33, %v153_v41  ;;  %v253_v57 = vadd.f32 %v245_v45, %v235_v43  ;;  %v307_v12 = vmul.f32 %v1237_v60, %v1359_v49  ;;  %v325_v16 = vmul.f32 %v1243_v63, %v1365_v59 }
  0x47   :  { %v340_v20 = vadd.f32 %v332_v29, %v286_v50  ;;  %v225_v22 = vadd.f32 %v217_v38, %v207_v21  ;;  %v90_v14 = vmul.f32 %v1153_v7, %v1392_v13  ;;  %v100_v23 = vmul.f32 %v1161_v11, %v1394_v17  ;;  %v1427_v21 = vld [vmem:[#allocation8 + $0x38] sm:$0xff] }
  0x48   :  { %v179_v25 = vmul.f32 %v171_v62, %v125_v40  ;;  %v271_v26 = vadd.f32 %v263_v51, %v253_v57  ;;  %v315_v28 = vadd.f32 %v307_v12, %v297_v54  ;;  %v118_v30 = vmul.f32 %v1171_v15, %v1400_v61  ;;  %v1437_v12 = vld [vmem:[#allocation8 + $0x78] sm:$0xff] }
  0x49   :  { %v350_v31 = vadd.f32 %v1251_v18, %v340_v20  ;;  %v108_v33 = vadd.f32 %v100_v23, %v90_v14  ;;  %v136_v34 = vmul.f32 %v1181_v19, %v1392_v13  ;;  %v146_v29 = vmul.f32 %v1191_v24, %v1394_v17  ;;  %v1445_v23 = vld [vmem:[#allocation8 + $0xb8] sm:$0xff] }
  0x4a   :  { %v279_v35 = vmul.f32 %v271_v26, %v225_v22  ;;  %v333_v37 = vadd.f32 %v325_v16, %v315_v28  ;;  %v164_v38 = vmul.f32 %v1195_v27, %v1400_v61  ;;  %v190_v40 = vmul.f32 %v1203_v32, %v1392_v13 }
  0x4b   :  { %358 = vst [vmem:[#allocation9 + $0x20] sm:$0xff] %v350_v31  ;;  %v126_v41 = vadd.f32 %v118_v30, %v108_v33  ;;  %v154_v43 = vadd.f32 %v146_v29, %v136_v34  ;;  %v200_v45 = vmul.f32 %v1207_v36, %v1394_v17  ;;  %v218_v50 = vmul.f32 %v1211_v39, %v1400_v61 }
  0x4c   :  { %v287_v51 = vsub.f32 %v179_v25, %v279_v35  ;;  %v236_v54 = vmul.f32 %v1219_v44, %v1392_v13  ;;  %v246_v62 = vmul.f32 %v1225_v48, %v1394_v17  ;;  %v264_v57 = vmul.f32 %v1229_v52, %v1400_v61 }
  0x4d   :  { %v172_v16 = vadd.f32 %v164_v38, %v154_v43  ;;  %v208_v20 = vadd.f32 %v200_v45, %v190_v40  ;;  %v298_v22 = vmul.f32 %v1233_v56, %v1392_v13  ;;  %v308_v14 = vmul.f32 %v1237_v60, %v1394_v17 }
  0x4e   :  { %v341_v25 = vadd.f32 %v333_v37, %v287_v51  ;;  %v254_v26 = vadd.f32 %v246_v62, %v236_v54  ;;  %v326_v28 = vmul.f32 %v1243_v63, %v1400_v61  ;;  %v91_v30 = vmul.f32 %v1153_v7, %v1427_v21 }
  0x4f   :  { %v180_v31 = vmul.f32 %v172_v16, %v126_v41  ;;  %v226_v33 = vadd.f32 %v218_v50, %v208_v20  ;;  %v316_v34 = vadd.f32 %v308_v14, %v298_v22  ;;  %v101_v29 = vmul.f32 %v1161_v11, %v1437_v12 }
  0x50   :  { %v351_v35 = vadd.f32 %v1251_v18, %v341_v25  ;;  %v272_v37 = vadd.f32 %v264_v57, %v254_v26  ;;  %v119_v38 = vmul.f32 %v1171_v15, %v1445_v23  ;;  %v137_v40 = vmul.f32 %v1181_v19, %v1427_v21 }
  0x51   :  { %v334_v7 = vadd.f32 %v326_v28, %v316_v34  ;;  %v109_v41 = vadd.f32 %v101_v29, %v91_v30  ;;  %v147_v43 = vmul.f32 %v1191_v24, %v1437_v12  ;;  %v165_v11 = vmul.f32 %v1195_v27, %v1445_v23 }
  0x52   :  { %359 = vst [vmem:[#allocation9 + $0x28] sm:$0xff] %v351_v35  ;;  %v280_v45 = vmul.f32 %v272_v37, %v226_v33  ;;  %v191_v15 = vmul.f32 %v1203_v32, %v1427_v21  ;;  %v201_v19 = vmul.f32 %v1207_v36, %v1437_v12  ;;  %v219_v50 = vmul.f32 %v1211_v39, %v1445_v23 }
  0x53   :  { %v127_v51 = vadd.f32 %v119_v38, %v109_v41  ;;  %v155_v24 = vadd.f32 %v147_v43, %v137_v40  ;;  %v237_v27 = vmul.f32 %v1219_v44, %v1427_v21  ;;  %v247_v54 = vmul.f32 %v1225_v48, %v1437_v12 }
  0x54   :  { %v288_v32 = vsub.f32 %v180_v31, %v280_v45  ;;  %v209_v62 = vadd.f32 %v201_v19, %v191_v15  ;;  %v265_v36 = vmul.f32 %v1229_v52, %v1445_v23  ;;  %v299_v39 = vmul.f32 %v1233_v56, %v1427_v21 }
  0x55   :  { %v173_v57 = vadd.f32 %v165_v11, %v155_v24  ;;  %v255_v16 = vadd.f32 %v247_v54, %v237_v27  ;;  %v309_v44 = vmul.f32 %v1237_v60, %v1437_v12  ;;  %v327_v48 = vmul.f32 %v1243_v63, %v1445_v23 }
  0x56   :  { %v342_v20 = vadd.f32 %v334_v7, %v288_v32  ;;  %v227_v22 = vadd.f32 %v219_v50, %v209_v62  ;;  %v1499_v52 = vstv %s1421_s13  ;;  %v1502_v14 = vstv %s1429_s14  ;;  %s1832_s13 = sld [smem:[#allocation2 + $0x2a]] }
  0x57   :  { %v181_v56 = vmul.f32 %v173_v57, %v127_v51  ;;  %v273_v25 = vadd.f32 %v265_v36, %v255_v16  ;;  %v317_v26 = vadd.f32 %v309_v44, %v299_v39  ;;  %v364_v60 = vmul.f32 %v1499_v52, %v1139_v0  ;;  %s1835_s14 = sld [smem:[#allocation2 + $0x2b]] }
  0x58   :  { %v352_v63 = vadd.f32 %v1251_v18, %v342_v20  ;;  %v374_v28 = vmul.f32 %v1502_v14, %v1145_v3  ;;  %v1514_v30 = vstv %s1439_s15  ;;  %v1517_v31 = vstv %s1447_s16  ;;  %s1845_s15 = sld [smem:[#allocation2 + $0x2c]] }
  0x59   :  { %v281_v33 = vmul.f32 %v273_v25, %v227_v22  ;;  %v335_v34 = vadd.f32 %v327_v48, %v317_v26  ;;  %v392_v29 = vmul.f32 %v1514_v30, %v1151_v6  ;;  %v410_v35 = vmul.f32 %v1517_v31, %v1139_v0  ;;  %s1858_s16 = sld [smem:[#allocation6 + $0x2]] }
  0x5a   :  { %360 = vst [vmem:[#allocation9 + $0x30] sm:$0xff] %v352_v63  ;;  %v382_v37 = vadd.f32 %v374_v28, %v364_v60  ;;  %v1526_v38 = vstv %s1453_s17  ;;  %v1529_v40 = vstv %s1457_s18  ;;  %v1532_v7 = vstv %s1464_s19  ;;  %s1106_s17 = smov [#allocation9]  }
  0x5b   :  { %v289_v41 = vsub.f32 %v181_v56, %v281_v33  ;;  %v420_v43 = vmul.f32 %v1526_v38, %v1145_v3  ;;  %v438_v11 = vmul.f32 %v1529_v40, %v1151_v6  ;;  %v464_v45 = vmul.f32 %v1532_v7, %v1139_v0  ;;  %s928_s18 = sshll.u32 %s1106_s17, 4  ;;  %s929_s18 = int_to_ptr.vmem [resolvable:$true] %s928_s18 }
  0x5c   :  { %v400_v15 = vadd.f32 %v392_v29, %v382_v37  ;;  %v1543_v19 = vstv %s1470_s20  ;;  %v1546_v50 = vstv %s1478_s21  ;;  %v1549_v51 = vstv %s1484_s22  ;;  %s930_s21 = sshll.u32 %s2021_s3, 4  ;;  %s931_s21 = int_to_ptr.hbm [resolvable:$true] %s930_s21 }
  0x5d   :  { %v343_v24 = vadd.f32 %v335_v34, %v289_v41  ;;  %v428_v27 = vadd.f32 %v420_v43, %v410_v35  ;;  %v474_v54 = vmul.f32 %v1543_v19, %v1145_v3  ;;  %v492_v32 = vmul.f32 %v1546_v50, %v1151_v6 }
  0x5e   :  { %v510_v62 = vmul.f32 %v1549_v51, %v1139_v0  ;;  %v1558_v36 = vstv %s1490_s23  ;;  %v1561_v39 = vstv %s1496_s24  ;;  %v1564_v57 = vstv %s1504_s1 }
  0x5f   :  { %v353_v16 = vadd.f32 %v1251_v18, %v343_v24  ;;  %v446_v44 = vadd.f32 %v438_v11, %v428_v27  ;;  %v482_v48 = vadd.f32 %v474_v54, %v464_v45  ;;  %v520_v20 = vmul.f32 %v1558_v36, %v1145_v3 }
  0x60   :  { %v538_v22 = vmul.f32 %v1561_v39, %v1151_v6  ;;  %v572_v56 = vmul.f32 %v1564_v57, %v1139_v0  ;;  %v1574_v25 = vstv %s1508_s26  ;;  %v1577_v26 = vstv %s1519_s2 }
  0x61   :  { %361 = vst [vmem:[#allocation9 + $0x38] sm:$0xff] %v353_v16  ;;  %v454_v60 = vmul.f32 %v446_v44, %v400_v15  ;;  %v500_v63 = vadd.f32 %v492_v32, %v482_v48  ;;  %v528_v28 = vadd.f32 %v520_v20, %v510_v62  ;;  %v582_v18 = vmul.f32 %v1574_v25, %v1145_v3 }
  0x62   :  { %v600_v33 = vmul.f32 %v1577_v26, %v1151_v6  ;;  %v1584_v34 = vstv %s1534_s27  ;;  %v365_v29 = vmul.f32 %v1499_v52, %v1141_v1  ;;  %v375_v0 = vmul.f32 %v1502_v14, %v1147_v4 }
  0x63   :  { %v546_v35 = vadd.f32 %v538_v22, %v528_v28  ;;  %v590_v37 = vadd.f32 %v582_v18, %v572_v56  ;;  %v393_v41 = vmul.f32 %v1514_v30, %v1155_v8  ;;  %v411_v43 = vmul.f32 %v1517_v31, %v1141_v1 }
  0x64   :  { %v383_v3 = vadd.f32 %v375_v0, %v365_v29  ;;  %v421_v6 = vmul.f32 %v1526_v38, %v1147_v4  ;;  %v439_v11 = vmul.f32 %v1529_v40, %v1155_v8  ;;  %v465_v45 = vmul.f32 %v1532_v7, %v1141_v1 }
  0x65   :  { %v554_v15 = vmul.f32 %v546_v35, %v500_v63  ;;  %v608_v24 = vadd.f32 %v600_v33, %v590_v37  ;;  %v475_v27 = vmul.f32 %v1543_v19, %v1147_v4  ;;  %v493_v54 = vmul.f32 %v1546_v50, %v1155_v8 }
  0x66   :  { %v401_v32 = vadd.f32 %v393_v41, %v383_v3  ;;  %v429_v62 = vadd.f32 %v421_v6, %v411_v43  ;;  %v511_v16 = vmul.f32 %v1549_v51, %v1141_v1  ;;  %v521_v44 = vmul.f32 %v1558_v36, %v1147_v4 }
  0x67   :  { %v562_v48 = vsub.f32 %v454_v60, %v554_v15  ;;  %v483_v20 = vadd.f32 %v475_v27, %v465_v45  ;;  %v539_v22 = vmul.f32 %v1561_v39, %v1155_v8  ;;  %v573_v56 = vmul.f32 %v1564_v57, %v1141_v1 }
  0x68   :  { %v447_v63 = vadd.f32 %v439_v11, %v429_v62  ;;  %v529_v28 = vadd.f32 %v521_v44, %v511_v16  ;;  %v583_v18 = vmul.f32 %v1574_v25, %v1147_v4  ;;  %v601_v33 = vmul.f32 %v1577_v26, %v1155_v8 }
  0x69   :  { %v616_v29 = vadd.f32 %v608_v24, %v562_v48  ;;  %v501_v0 = vadd.f32 %v493_v54, %v483_v20  ;;  %v366_v60 = vmul.f32 %v1499_v52, %v1143_v2  ;;  %v376_v35 = vmul.f32 %v1502_v14, %v1149_v5 }
  0x6a   :  { %v455_v37 = vmul.f32 %v447_v63, %v401_v32  ;;  %v547_v41 = vadd.f32 %v539_v22, %v529_v28  ;;  %v591_v43 = vadd.f32 %v583_v18, %v573_v56  ;;  %v394_v1 = vmul.f32 %v1514_v30, %v1157_v9 }
  0x6b   :  { %v626_v3 = vadd.f32 %v1584_v34, %v616_v29  ;;  %v384_v4 = vadd.f32 %v376_v35, %v366_v60  ;;  %v412_v8 = vmul.f32 %v1517_v31, %v1143_v2  ;;  %v422_v6 = vmul.f32 %v1526_v38, %v1149_v5 }
  0x6c   :  { %v555_v11 = vmul.f32 %v547_v41, %v501_v0  ;;  %v609_v45 = vadd.f32 %v601_v33, %v591_v43  ;;  %v440_v15 = vmul.f32 %v1529_v40, %v1157_v9  ;;  %v466_v24 = vmul.f32 %v1532_v7, %v1143_v2 }
  0x6d   :  { %635 = vst [vmem:[#allocation9 + $0x40] sm:$0xff] %v626_v3  ;;  %v402_v27 = vadd.f32 %v394_v1, %v384_v4  ;;  %v430_v54 = vadd.f32 %v422_v6, %v412_v8  ;;  %v476_v32 = vmul.f32 %v1543_v19, %v1149_v5  ;;  %v494_v62 = vmul.f32 %v1546_v50, %v1157_v9 }
  0x6e   :  { %v563_v16 = vsub.f32 %v455_v37, %v555_v11  ;;  %v512_v44 = vmul.f32 %v1549_v51, %v1143_v2  ;;  %v522_v48 = vmul.f32 %v1558_v36, %v1149_v5  ;;  %v540_v20 = vmul.f32 %v1561_v39, %v1157_v9 }
  0x6f   :  { %v448_v22 = vadd.f32 %v440_v15, %v430_v54  ;;  %v484_v56 = vadd.f32 %v476_v32, %v466_v24  ;;  %v574_v63 = vmul.f32 %v1564_v57, %v1143_v2  ;;  %v584_v28 = vmul.f32 %v1574_v25, %v1149_v5 }
  0x70   :  { %v617_v18 = vadd.f32 %v609_v45, %v563_v16  ;;  %v530_v33 = vadd.f32 %v522_v48, %v512_v44  ;;  %v602_v29 = vmul.f32 %v1577_v26, %v1157_v9  ;;  %v367_v0 = vmul.f32 %v1499_v52, %v1280_v55 }
  0x71   :  { %v456_v60 = vmul.f32 %v448_v22, %v402_v27  ;;  %v502_v35 = vadd.f32 %v494_v62, %v484_v56  ;;  %v592_v37 = vadd.f32 %v584_v28, %v574_v63  ;;  %v377_v41 = vmul.f32 %v1502_v14, %v1282_v58 }
  0x72   :  { %v627_v43 = vadd.f32 %v1584_v34, %v617_v18  ;;  %v548_v2 = vadd.f32 %v540_v20, %v530_v33  ;;  %v395_v5 = vmul.f32 %v1514_v30, %v1291_v10  ;;  %v413_v1 = vmul.f32 %v1517_v31, %v1280_v55 }
  0x73   :  { %v610_v3 = vadd.f32 %v602_v29, %v592_v37  ;;  %v385_v9 = vadd.f32 %v377_v41, %v367_v0  ;;  %v423_v4 = vmul.f32 %v1526_v38, %v1282_v58  ;;  %v441_v8 = vmul.f32 %v1529_v40, %v1291_v10 }
  0x74   :  { %636 = vst [vmem:[#allocation9 + $0x48] sm:$0xff] %v627_v43  ;;  %v556_v6 = vmul.f32 %v548_v2, %v502_v35  ;;  %v467_v11 = vmul.f32 %v1532_v7, %v1280_v55  ;;  %v477_v45 = vmul.f32 %v1543_v19, %v1282_v58  ;;  %v495_v15 = vmul.f32 %v1546_v50, %v1291_v10 }
  0x75   :  { %v403_v24 = vadd.f32 %v395_v5, %v385_v9  ;;  %v431_v27 = vadd.f32 %v423_v4, %v413_v1  ;;  %v513_v54 = vmul.f32 %v1549_v51, %v1280_v55  ;;  %v523_v32 = vmul.f32 %v1558_v36, %v1282_v58 }
  0x76   :  { %v564_v62 = vsub.f32 %v456_v60, %v556_v6  ;;  %v485_v16 = vadd.f32 %v477_v45, %v467_v11  ;;  %v541_v44 = vmul.f32 %v1561_v39, %v1291_v10  ;;  %v575_v48 = vmul.f32 %v1564_v57, %v1280_v55 }
  0x77   :  { %v449_v20 = vadd.f32 %v441_v8, %v431_v27  ;;  %v531_v22 = vadd.f32 %v523_v32, %v513_v54  ;;  %v585_v56 = vmul.f32 %v1574_v25, %v1282_v58  ;;  %v603_v63 = vmul.f32 %v1577_v26, %v1291_v10 }
  0x78   :  { %v618_v28 = vadd.f32 %v610_v3, %v564_v62  ;;  %v503_v18 = vadd.f32 %v495_v15, %v485_v16  ;;  %v368_v33 = vmul.f32 %v1499_v52, %v1318_v46  ;;  %v378_v29 = vmul.f32 %v1502_v14, %v1320_v47 }
  0x79   :  { %v457_v0 = vmul.f32 %v449_v20, %v403_v24  ;;  %v549_v60 = vadd.f32 %v541_v44, %v531_v22  ;;  %v593_v35 = vadd.f32 %v585_v56, %v575_v48  ;;  %v396_v55 = vmul.f32 %v1514_v30, %v1326_v53 }
  0x7a   :  { %v628_v37 = vadd.f32 %v1584_v34, %v618_v28  ;;  %v386_v58 = vadd.f32 %v378_v29, %v368_v33  ;;  %v414_v10 = vmul.f32 %v1517_v31, %v1318_v46  ;;  %v424_v41 = vmul.f32 %v1526_v38, %v1320_v47 }
  0x7b   :  { %v557_v43 = vmul.f32 %v549_v60, %v503_v18  ;;  %v611_v2 = vadd.f32 %v603_v63, %v593_v35  ;;  %v442_v5 = vmul.f32 %v1529_v40, %v1326_v53  ;;  %v468_v1 = vmul.f32 %v1532_v7, %v1318_v46 }
  0x7c   :  { %637 = vst [vmem:[#allocation9 + $0x50] sm:$0xff] %v628_v37  ;;  %v404_v3 = vadd.f32 %v396_v55, %v386_v58  ;;  %v432_v9 = vadd.f32 %v424_v41, %v414_v10  ;;  %v478_v4 = vmul.f32 %v1543_v19, %v1320_v47  ;;  %v496_v8 = vmul.f32 %v1546_v50, %v1326_v53 }
  0x7d   :  { %v565_v6 = vsub.f32 %v457_v0, %v557_v43  ;;  %v514_v11 = vmul.f32 %v1549_v51, %v1318_v46  ;;  %v524_v45 = vmul.f32 %v1558_v36, %v1320_v47  ;;  %v542_v15 = vmul.f32 %v1561_v39, %v1326_v53 }
  0x7e   :  { %v450_v24 = vadd.f32 %v442_v5, %v432_v9  ;;  %v486_v27 = vadd.f32 %v478_v4, %v468_v1  ;;  %v576_v54 = vmul.f32 %v1564_v57, %v1318_v46  ;;  %v586_v32 = vmul.f32 %v1574_v25, %v1320_v47 }
  0x7f   :  { %v619_v62 = vadd.f32 %v611_v2, %v565_v6  ;;  %v532_v16 = vadd.f32 %v524_v45, %v514_v11  ;;  %v604_v44 = vmul.f32 %v1577_v26, %v1326_v53  ;;  %v369_v48 = vmul.f32 %v1499_v52, %v1351_v42 }
  0x80   :  { %v458_v20 = vmul.f32 %v450_v24, %v404_v3  ;;  %v504_v22 = vadd.f32 %v496_v8, %v486_v27  ;;  %v594_v56 = vadd.f32 %v586_v32, %v576_v54  ;;  %v379_v63 = vmul.f32 %v1502_v14, %v1359_v49 }
  0x81   :  { %v629_v28 = vadd.f32 %v1584_v34, %v619_v62  ;;  %v550_v46 = vadd.f32 %v542_v15, %v532_v16  ;;  %v397_v47 = vmul.f32 %v1514_v30, %v1365_v59  ;;  %v415_v18 = vmul.f32 %v1517_v31, %v1351_v42 }
  0x82   :  { %v612_v33 = vadd.f32 %v604_v44, %v594_v56  ;;  %v387_v53 = vadd.f32 %v379_v63, %v369_v48  ;;  %v425_v29 = vmul.f32 %v1526_v38, %v1359_v49  ;;  %v443_v0 = vmul.f32 %v1529_v40, %v1365_v59 }
  0x83   :  { %638 = vst [vmem:[#allocation9 + $0x58] sm:$0xff] %v629_v28  ;;  %v558_v60 = vmul.f32 %v550_v46, %v504_v22  ;;  %v469_v35 = vmul.f32 %v1532_v7, %v1351_v42  ;;  %v479_v55 = vmul.f32 %v1543_v19, %v1359_v49  ;;  %v497_v37 = vmul.f32 %v1546_v50, %v1365_v59 }
  0x84   :  { %v405_v58 = vadd.f32 %v397_v47, %v387_v53  ;;  %v433_v10 = vadd.f32 %v425_v29, %v415_v18  ;;  %v515_v41 = vmul.f32 %v1549_v51, %v1351_v42  ;;  %v525_v43 = vmul.f32 %v1558_v36, %v1359_v49 }
  0x85   :  { %v566_v2 = vsub.f32 %v458_v20, %v558_v60  ;;  %v487_v5 = vadd.f32 %v479_v55, %v469_v35  ;;  %v543_v1 = vmul.f32 %v1561_v39, %v1365_v59  ;;  %v577_v3 = vmul.f32 %v1564_v57, %v1351_v42 }
  0x86   :  { %v451_v9 = vadd.f32 %v443_v0, %v433_v10  ;;  %v533_v4 = vadd.f32 %v525_v43, %v515_v41  ;;  %v587_v8 = vmul.f32 %v1574_v25, %v1359_v49  ;;  %v605_v6 = vmul.f32 %v1577_v26, %v1365_v59 }
  0x87   :  { %v620_v11 = vadd.f32 %v612_v33, %v566_v2  ;;  %v505_v45 = vadd.f32 %v497_v37, %v487_v5  ;;  %v370_v15 = vmul.f32 %v1499_v52, %v1392_v13  ;;  %v380_v24 = vmul.f32 %v1502_v14, %v1394_v17 }
  0x88   :  { %v459_v27 = vmul.f32 %v451_v9, %v405_v58  ;;  %v551_v54 = vadd.f32 %v543_v1, %v533_v4  ;;  %v595_v32 = vadd.f32 %v587_v8, %v577_v3  ;;  %v398_v42 = vmul.f32 %v1514_v30, %v1400_v61 }
  0x89   :  { %v630_v62 = vadd.f32 %v1584_v34, %v620_v11  ;;  %v388_v49 = vadd.f32 %v380_v24, %v370_v15  ;;  %v416_v59 = vmul.f32 %v1517_v31, %v1392_v13  ;;  %v426_v16 = vmul.f32 %v1526_v38, %v1394_v17 }
  0x8a   :  { %v559_v44 = vmul.f32 %v551_v54, %v505_v45  ;;  %v613_v48 = vadd.f32 %v605_v6, %v595_v32  ;;  %v444_v20 = vmul.f32 %v1529_v40, %v1400_v61  ;;  %v470_v22 = vmul.f32 %v1532_v7, %v1392_v13 }
  0x8b   :  { %639 = vst [vmem:[#allocation9 + $0x60] sm:$0xff] %v630_v62  ;;  %v406_v56 = vadd.f32 %v398_v42, %v388_v49  ;;  %v434_v63 = vadd.f32 %v426_v16, %v416_v59  ;;  %v480_v28 = vmul.f32 %v1543_v19, %v1394_v17  ;;  %v498_v46 = vmul.f32 %v1546_v50, %v1400_v61  ;;  %v997_v62 = vld [vmem:[#allocation8] sm:$0xff] }
  0x8c   :  { %v567_v47 = vsub.f32 %v459_v27, %v559_v44  ;;  %v516_v18 = vmul.f32 %v1549_v51, %v1392_v13  ;;  %v526_v33 = vmul.f32 %v1558_v36, %v1394_v17  ;;  %v544_v53 = vmul.f32 %v1561_v39, %v1400_v61 }
  0x8d   :  { %v452_v29 = vadd.f32 %v444_v20, %v434_v63  ;;  %v488_v0 = vadd.f32 %v480_v28, %v470_v22  ;;  %v578_v60 = vmul.f32 %v1564_v57, %v1392_v13  ;;  %v588_v35 = vmul.f32 %v1574_v25, %v1394_v17 }
  0x8e   :  { %v621_v55 = vadd.f32 %v613_v48, %v567_v47  ;;  %v534_v37 = vadd.f32 %v526_v33, %v516_v18  ;;  %v606_v58 = vmul.f32 %v1577_v26, %v1400_v61  ;;  %v371_v10 = vmul.f32 %v1499_v52, %v1427_v21  ;;  %v999_v48 = vld [vmem:[#allocation8 + $0x80] sm:$0xff] }
  0x8f   :  { %v460_v41 = vmul.f32 %v452_v29, %v406_v56  ;;  %v506_v43 = vadd.f32 %v498_v46, %v488_v0  ;;  %v596_v2 = vadd.f32 %v588_v35, %v578_v60  ;;  %v381_v13 = vmul.f32 %v1502_v14, %v1437_v12 }
  0x90   :  { %v631_v17 = vadd.f32 %v1584_v34, %v621_v55  ;;  %v552_v5 = vadd.f32 %v544_v53, %v534_v37  ;;  %v399_v1 = vmul.f32 %v1514_v30, %v1445_v23  ;;  %v417_v61 = vmul.f32 %v1517_v31, %v1427_v21 }
  0x91   :  { %v614_v52 = vadd.f32 %v606_v58, %v596_v2  ;;  %v389_v3 = vadd.f32 %v381_v13, %v371_v10  ;;  %v427_v9 = vmul.f32 %v1526_v38, %v1437_v12  ;;  %v445_v14 = vmul.f32 %v1529_v40, %v1445_v23 }
  0x92   :  { %640 = vst [vmem:[#allocation9 + $0x68] sm:$0xff] %v631_v17  ;;  %v560_v4 = vmul.f32 %v552_v5, %v506_v43  ;;  %v471_v30 = vmul.f32 %v1532_v7, %v1427_v21  ;;  %v481_v31 = vmul.f32 %v1543_v19, %v1437_v12  ;;  %v499_v8 = vmul.f32 %v1546_v50, %v1445_v23 }
  0x93   :  { %v407_v6 = vadd.f32 %v399_v1, %v389_v3  ;;  %v435_v38 = vadd.f32 %v427_v9, %v417_v61  ;;  %v517_v40 = vmul.f32 %v1549_v51, %v1427_v21  ;;  %v527_v11 = vmul.f32 %v1558_v36, %v1437_v12 }
  0x94   :  { %v568_v7 = vsub.f32 %v460_v41, %v560_v4  ;;  %v489_v45 = vadd.f32 %v481_v31, %v471_v30  ;;  %v545_v19 = vmul.f32 %v1561_v39, %v1445_v23  ;;  %v579_v50 = vmul.f32 %v1564_v57, %v1427_v21 }
  0x95   :  { %v453_v15 = vadd.f32 %v445_v14, %v435_v38  ;;  %v535_v24 = vadd.f32 %v527_v11, %v517_v40  ;;  %v589_v51 = vmul.f32 %v1574_v25, %v1437_v12  ;;  %v607_v36 = vmul.f32 %v1577_v26, %v1445_v23  ;;  %v998_v25 = vld [vmem:[#allocation8 + $0x40] sm:$0xff]  ;;  %v1000_v38 = vld [vmem:[#allocation8 + $0x8] sm:$0xff] }
  0x96   :  { %v622_v27 = vadd.f32 %v614_v52, %v568_v7  ;;  %v507_v54 = vadd.f32 %v499_v8, %v489_v45  ;;  %v1827_v39 = vstv %s1755_s28  ;;  %v1830_v32 = vstv %s1761_s29  ;;  %v1001_v11 = vld [vmem:[#allocation8 + $0x48] sm:$0xff] }
  0x97   :  { %v461_v21 = vmul.f32 %v453_v15, %v407_v6  ;;  %v553_v57 = vadd.f32 %v545_v19, %v535_v24  ;;  %v597_v42 = vadd.f32 %v589_v51, %v579_v50  ;;  %v645_v12 = vmul.f32 %v997_v62, %v1827_v39  ;;  %v1002_v50 = vld [vmem:[#allocation8 + $0x88] sm:$0xff] }
  0x98   :  { %v632_v23 = vadd.f32 %v1584_v34, %v622_v27  ;;  %v655_v26 = vmul.f32 %v998_v25, %v1830_v32  ;;  %v1840_v49 = vstv %s1769_s30  ;;  %v1843_v59 = vstv %s1775_s4 }
  0x99   :  { %v561_v16 = vmul.f32 %v553_v57, %v507_v54  ;;  %v615_v44 = vadd.f32 %v607_v36, %v597_v42  ;;  %v673_v20 = vmul.f32 %v999_v48, %v1840_v49  ;;  %v691_v22 = vmul.f32 %v997_v62, %v1843_v59 }
  0x9a   :  { %641 = vst [vmem:[#allocation9 + $0x70] sm:$0xff] %v632_v23  ;;  %v663_v56 = vadd.f32 %v655_v26, %v645_v12  ;;  %v1850_v63 = vstv %s1781_s5  ;;  %v1853_v28 = vstv %s1785_s6  ;;  %v1856_v46 = vstv %s1792_s7 }
  0x9b   :  { %v569_v47 = vsub.f32 %v461_v21, %v561_v16  ;;  %v701_v18 = vmul.f32 %v998_v25, %v1850_v63  ;;  %v719_v33 = vmul.f32 %v999_v48, %v1853_v28  ;;  %v745_v53 = vmul.f32 %v997_v62, %v1856_v46 }
  0x9c   :  { %v681_v29 = vadd.f32 %v673_v20, %v663_v56  ;;  %v1864_v0 = vstv %s1798_s8  ;;  %v1867_v60 = vstv %s1806_s9  ;;  %v1870_v35 = vstv %s1812_s10 }
  0x9d   :  { %v623_v55 = vadd.f32 %v615_v44, %v569_v47  ;;  %v709_v37 = vadd.f32 %v701_v18, %v691_v22  ;;  %v755_v58 = vmul.f32 %v998_v25, %v1864_v0  ;;  %v773_v10 = vmul.f32 %v999_v48, %v1867_v60 }
  0x9e   :  { %v791_v41 = vmul.f32 %v997_v62, %v1870_v35  ;;  %v1876_v43 = vstv %s1818_s11  ;;  %v1879_v2 = vstv %s1824_s12  ;;  %v1882_v13 = vstv %s1832_s13 }
  0x9f   :  { %v633_v17 = vadd.f32 %v1584_v34, %v623_v55  ;;  %v727_v5 = vadd.f32 %v719_v33, %v709_v37  ;;  %v763_v1 = vadd.f32 %v755_v58, %v745_v53  ;;  %v801_v61 = vmul.f32 %v998_v25, %v1876_v43  ;;  %v1004_v37 = vld [vmem:[#allocation8 + $0x50] sm:$0xff] }
  0xa0   :  { %v819_v52 = vmul.f32 %v999_v48, %v1879_v2  ;;  %v853_v3 = vmul.f32 %v997_v62, %v1882_v13  ;;  %v1889_v9 = vstv %s1835_s14  ;;  %v1892_v14 = vstv %s1845_s15 }
  0xa1   :  { %642 = vst [vmem:[#allocation9 + $0x78] sm:$0xff] %v633_v17  ;;  %v735_v4 = vmul.f32 %v727_v5, %v681_v29  ;;  %v781_v30 = vadd.f32 %v773_v10, %v763_v1  ;;  %v809_v31 = vadd.f32 %v801_v61, %v791_v41  ;;  %v863_v8 = vmul.f32 %v998_v25, %v1889_v9  ;;  %v1003_v29 = vld [vmem:[#allocation8 + $0x10] sm:$0xff] }
  0xa2   :  { %v881_v34 = vmul.f32 %v999_v48, %v1892_v14  ;;  %v1897_v6 = vstv %s1858_s16  ;;  %v646_v40 = vmul.f32 %v1000_v38, %v1827_v39  ;;  %v656_v7 = vmul.f32 %v1001_v11, %v1830_v32  ;;  %v1005_v5 = vld [vmem:[#allocation8 + $0x90] sm:$0xff] }
  0xa3   :  { %v827_v45 = vadd.f32 %v819_v52, %v809_v31  ;;  %v871_v19 = vadd.f32 %v863_v8, %v853_v3  ;;  %v674_v15 = vmul.f32 %v1002_v50, %v1840_v49  ;;  %v692_v24 = vmul.f32 %v1000_v38, %v1843_v59 }
  0xa4   :  { %v664_v51 = vadd.f32 %v656_v7, %v646_v40  ;;  %v702_v36 = vmul.f32 %v1001_v11, %v1850_v63  ;;  %v720_v27 = vmul.f32 %v1002_v50, %v1853_v28  ;;  %v746_v54 = vmul.f32 %v1000_v38, %v1856_v46 }
  0xa5   :  { %v835_v21 = vmul.f32 %v827_v45, %v781_v30  ;;  %v889_v57 = vadd.f32 %v881_v34, %v871_v19  ;;  %v756_v42 = vmul.f32 %v1001_v11, %v1864_v0  ;;  %v774_v62 = vmul.f32 %v1002_v50, %v1867_v60 }
  0xa6   :  { %v682_v12 = vadd.f32 %v674_v15, %v664_v51  ;;  %v710_v23 = vadd.f32 %v702_v36, %v692_v24  ;;  %v792_v25 = vmul.f32 %v1000_v38, %v1870_v35  ;;  %v802_v26 = vmul.f32 %v1001_v11, %v1876_v43 }
  0xa7   :  { %v843_v16 = vsub.f32 %v735_v4, %v835_v21  ;;  %v764_v44 = vadd.f32 %v756_v42, %v746_v54  ;;  %v820_v48 = vmul.f32 %v1002_v50, %v1879_v2  ;;  %v854_v20 = vmul.f32 %v1000_v38, %v1882_v13  ;;  %v1006_v42 = vld [vmem:[#allocation8 + $0x18] sm:$0xff] }
  0xa8   :  { %v728_v22 = vadd.f32 %v720_v27, %v710_v23  ;;  %v810_v56 = vadd.f32 %v802_v26, %v792_v25  ;;  %v864_v47 = vmul.f32 %v1001_v11, %v1889_v9  ;;  %v882_v18 = vmul.f32 %v1002_v50, %v1892_v14  ;;  %v1007_v26 = vld [vmem:[#allocation8 + $0x58] sm:$0xff] }
  0xa9   :  { %v897_v33 = vadd.f32 %v889_v57, %v843_v16  ;;  %v782_v53 = vadd.f32 %v774_v62, %v764_v44  ;;  %v647_v55 = vmul.f32 %v1003_v29, %v1827_v39  ;;  %v657_v58 = vmul.f32 %v1004_v37, %v1830_v32 }
  0xaa   :  { %v736_v10 = vmul.f32 %v728_v22, %v682_v12  ;;  %v828_v41 = vadd.f32 %v820_v48, %v810_v56  ;;  %v872_v17 = vadd.f32 %v864_v47, %v854_v20  ;;  %v675_v1 = vmul.f32 %v1005_v5, %v1840_v49  ;;  %v1008_v20 = vld [vmem:[#allocation8 + $0x98] sm:$0xff] }
  0xab   :  { %v907_v61 = vadd.f32 %v1897_v6, %v897_v33  ;;  %v665_v52 = vadd.f32 %v657_v58, %v647_v55  ;;  %v693_v3 = vmul.f32 %v1003_v29, %v1843_v59  ;;  %v703_v4 = vmul.f32 %v1004_v37, %v1850_v63 }
  0xac   :  { %v836_v30 = vmul.f32 %v828_v41, %v782_v53  ;;  %v890_v31 = vadd.f32 %v882_v18, %v872_v17  ;;  %v721_v8 = vmul.f32 %v1005_v5, %v1853_v28  ;;  %v747_v34 = vmul.f32 %v1003_v29, %v1856_v46 }
  0xad   :  { %916 = vst [vmem:[#allocation9 + $0x80] sm:$0xff] %v907_v61  ;;  %v683_v38 = vadd.f32 %v675_v1, %v665_v52  ;;  %v711_v40 = vadd.f32 %v703_v4, %v693_v3  ;;  %v757_v11 = vmul.f32 %v1004_v37, %v1864_v0  ;;  %v775_v7 = vmul.f32 %v1005_v5, %v1867_v60 }
  0xae   :  { %v844_v45 = vsub.f32 %v736_v10, %v836_v30  ;;  %v793_v19 = vmul.f32 %v1003_v29, %v1870_v35  ;;  %v803_v50 = vmul.f32 %v1004_v37, %v1876_v43  ;;  %v821_v15 = vmul.f32 %v1005_v5, %v1879_v2 }
  0xaf   :  { %v729_v24 = vadd.f32 %v721_v8, %v711_v40  ;;  %v765_v51 = vadd.f32 %v757_v11, %v747_v34  ;;  %v855_v36 = vmul.f32 %v1003_v29, %v1882_v13  ;;  %v865_v27 = vmul.f32 %v1004_v37, %v1889_v9  ;;  %v1009_v40 = vld [vmem:[#allocation8 + $0x20] sm:$0xff] }
  0xb0   :  { %v898_v54 = vadd.f32 %v890_v31, %v844_v45  ;;  %v811_v21 = vadd.f32 %v803_v50, %v793_v19  ;;  %v883_v57 = vmul.f32 %v1005_v5, %v1892_v14  ;;  %v648_v62 = vmul.f32 %v1006_v42, %v1827_v39 }
  0xb1   :  { %v737_v12 = vmul.f32 %v729_v24, %v683_v38  ;;  %v783_v23 = vadd.f32 %v775_v7, %v765_v51  ;;  %v873_v25 = vadd.f32 %v865_v27, %v855_v36  ;;  %v658_v16 = vmul.f32 %v1007_v26, %v1830_v32  ;;  %v1010_v7 = vld [vmem:[#allocation8 + $0x60] sm:$0xff] }
  0xb2   :  { %v908_v44 = vadd.f32 %v1897_v6, %v898_v54  ;;  %v829_v48 = vadd.f32 %v821_v15, %v811_v21  ;;  %v676_v22 = vmul.f32 %v1008_v20, %v1840_v49  ;;  %v694_v56 = vmul.f32 %v1006_v42, %v1843_v59  ;;  %v1011_v24 = vld [vmem:[#allocation8 + $0xa0] sm:$0xff] }
  0xb3   :  { %v891_v47 = vadd.f32 %v883_v57, %v873_v25  ;;  %v666_v18 = vadd.f32 %v658_v16, %v648_v62  ;;  %v704_v33 = vmul.f32 %v1007_v26, %v1850_v63  ;;  %v722_v53 = vmul.f32 %v1008_v20, %v1853_v28 }
  0xb4   :  { %917 = vst [vmem:[#allocation9 + $0x88] sm:$0xff] %v908_v44  ;;  %v837_v29 = vmul.f32 %v829_v48, %v783_v23  ;;  %v748_v55 = vmul.f32 %v1006_v42, %v1856_v46  ;;  %v758_v37 = vmul.f32 %v1007_v26, %v1864_v0  ;;  %v776_v58 = vmul.f32 %v1008_v20, %v1867_v60 }
  0xb5   :  { %v684_v10 = vadd.f32 %v676_v22, %v666_v18  ;;  %v712_v41 = vadd.f32 %v704_v33, %v694_v56  ;;  %v794_v17 = vmul.f32 %v1006_v42, %v1870_v35  ;;  %v804_v5 = vmul.f32 %v1007_v26, %v1876_v43 }
  0xb6   :  { %v845_v1 = vsub.f32 %v737_v12, %v837_v29  ;;  %v766_v61 = vadd.f32 %v758_v37, %v748_v55  ;;  %v822_v52 = vmul.f32 %v1008_v20, %v1879_v2  ;;  %v856_v3 = vmul.f32 %v1006_v42, %v1882_v13  ;;  %v1012_v37 = vld [vmem:[#allocation8 + $0x28] sm:$0xff] }
  0xb7   :  { %v730_v4 = vadd.f32 %v722_v53, %v712_v41  ;;  %v812_v30 = vadd.f32 %v804_v5, %v794_v17  ;;  %v866_v31 = vmul.f32 %v1007_v26, %v1889_v9  ;;  %v884_v8 = vmul.f32 %v1008_v20, %v1892_v14  ;;  %v1013_v5 = vld [vmem:[#allocation8 + $0x68] sm:$0xff] }
  0xb8   :  { %v899_v34 = vadd.f32 %v891_v47, %v845_v1  ;;  %v784_v38 = vadd.f32 %v776_v58, %v766_v61  ;;  %v649_v11 = vmul.f32 %v1009_v40, %v1827_v39  ;;  %v659_v45 = vmul.f32 %v1010_v7, %v1830_v32 }
  0xb9   :  { %v738_v19 = vmul.f32 %v730_v4, %v684_v10  ;;  %v830_v50 = vadd.f32 %v822_v52, %v812_v30  ;;  %v874_v15 = vadd.f32 %v866_v31, %v856_v3  ;;  %v677_v51 = vmul.f32 %v1011_v24, %v1840_v49  ;;  %v1014_v3 = vld [vmem:[#allocation8 + $0xa8] sm:$0xff] }
  0xba   :  { %v909_v36 = vadd.f32 %v1897_v6, %v899_v34  ;;  %v667_v27 = vadd.f32 %v659_v45, %v649_v11  ;;  %v695_v54 = vmul.f32 %v1009_v40, %v1843_v59  ;;  %v705_v21 = vmul.f32 %v1010_v7, %v1850_v63 }
  0xbb   :  { %v838_v57 = vmul.f32 %v830_v50, %v784_v38  ;;  %v892_v42 = vadd.f32 %v884_v8, %v874_v15  ;;  %v723_v62 = vmul.f32 %v1011_v24, %v1853_v28  ;;  %v749_v12 = vmul.f32 %v1009_v40, %v1856_v46 }
  0xbc   :  { %918 = vst [vmem:[#allocation9 + $0x90] sm:$0xff] %v909_v36  ;;  %v685_v23 = vadd.f32 %v677_v51, %v667_v27  ;;  %v713_v25 = vadd.f32 %v705_v21, %v695_v54  ;;  %v759_v26 = vmul.f32 %v1010_v7, %v1864_v0  ;;  %v777_v16 = vmul.f32 %v1011_v24, %v1867_v60 }
  0xbd   :  { %v846_v44 = vsub.f32 %v738_v19, %v838_v57  ;;  %v795_v48 = vmul.f32 %v1009_v40, %v1870_v35  ;;  %v805_v20 = vmul.f32 %v1010_v7, %v1876_v43  ;;  %v823_v22 = vmul.f32 %v1011_v24, %v1879_v2 }
  0xbe   :  { %v731_v56 = vadd.f32 %v723_v62, %v713_v25  ;;  %v767_v47 = vadd.f32 %v759_v26, %v749_v12  ;;  %v857_v18 = vmul.f32 %v1009_v40, %v1882_v13  ;;  %v867_v33 = vmul.f32 %v1010_v7, %v1889_v9  ;;  %v1015_v25 = vld [vmem:[#allocation8 + $0x30] sm:$0xff] }
  0xbf   :  { %v900_v53 = vadd.f32 %v892_v42, %v846_v44  ;;  %v813_v29 = vadd.f32 %v805_v20, %v795_v48  ;;  %v885_v55 = vmul.f32 %v1011_v24, %v1892_v14  ;;  %v650_v58 = vmul.f32 %v1012_v37, %v1827_v39 }
  0xc0   :  { %v739_v10 = vmul.f32 %v731_v56, %v685_v23  ;;  %v785_v41 = vadd.f32 %v777_v16, %v767_v47  ;;  %v875_v17 = vadd.f32 %v867_v33, %v857_v18  ;;  %v660_v1 = vmul.f32 %v1013_v5, %v1830_v32  ;;  %v1016_v16 = vld [vmem:[#allocation8 + $0x70] sm:$0xff] }
  0xc1   :  { %v910_v61 = vadd.f32 %v1897_v6, %v900_v53  ;;  %v831_v52 = vadd.f32 %v823_v22, %v813_v29  ;;  %v678_v4 = vmul.f32 %v1014_v3, %v1840_v49  ;;  %v696_v30 = vmul.f32 %v1012_v37, %v1843_v59  ;;  %v1017_v56 = vld [vmem:[#allocation8 + $0xb0] sm:$0xff] }
  0xc2   :  { %v893_v31 = vadd.f32 %v885_v55, %v875_v17  ;;  %v668_v8 = vadd.f32 %v660_v1, %v650_v58  ;;  %v706_v34 = vmul.f32 %v1013_v5, %v1850_v63  ;;  %v724_v38 = vmul.f32 %v1014_v3, %v1853_v28 }
  0xc3   :  { %919 = vst [vmem:[#allocation9 + $0x98] sm:$0xff] %v910_v61  ;;  %v839_v40 = vmul.f32 %v831_v52, %v785_v41  ;;  %v750_v11 = vmul.f32 %v1012_v37, %v1856_v46  ;;  %v760_v7 = vmul.f32 %v1013_v5, %v1864_v0  ;;  %v778_v45 = vmul.f32 %v1014_v3, %v1867_v60 }
  0xc4   :  { %v686_v19 = vadd.f32 %v678_v4, %v668_v8  ;;  %v714_v50 = vadd.f32 %v706_v34, %v696_v30  ;;  %v796_v15 = vmul.f32 %v1012_v37, %v1870_v35  ;;  %v806_v24 = vmul.f32 %v1013_v5, %v1876_v43 }
  0xc5   :  { %v847_v51 = vsub.f32 %v739_v10, %v839_v40  ;;  %v768_v36 = vadd.f32 %v760_v7, %v750_v11  ;;  %v824_v27 = vmul.f32 %v1014_v3, %v1879_v2  ;;  %v858_v54 = vmul.f32 %v1012_v37, %v1882_v13  ;;  %v1018_v7 = vld [vmem:[#allocation8 + $0x38] sm:$0xff] }
  0xc6   :  { %v732_v21 = vadd.f32 %v724_v38, %v714_v50  ;;  %v814_v57 = vadd.f32 %v806_v24, %v796_v15  ;;  %v868_v42 = vmul.f32 %v1013_v5, %v1889_v9  ;;  %v886_v62 = vmul.f32 %v1014_v3, %v1892_v14  ;;  %v1019_v24 = vld [vmem:[#allocation8 + $0x78] sm:$0xff] }
  0xc7   :  { %v901_v12 = vadd.f32 %v893_v31, %v847_v51  ;;  %v786_v23 = vadd.f32 %v778_v45, %v768_v36  ;;  %v651_v26 = vmul.f32 %v1015_v25, %v1827_v39  ;;  %v661_v44 = vmul.f32 %v1016_v16, %v1830_v32 }
  0xc8   :  { %v740_v48 = vmul.f32 %v732_v21, %v686_v19  ;;  %v832_v20 = vadd.f32 %v824_v27, %v814_v57  ;;  %v876_v22 = vadd.f32 %v868_v42, %v858_v54  ;;  %v679_v47 = vmul.f32 %v1017_v56, %v1840_v49  ;;  %v1020_v54 = vld [vmem:[#allocation8 + $0xb8] sm:$0xff] }
  0xc9   :  { %v911_v18 = vadd.f32 %v1897_v6, %v901_v12  ;;  %v669_v33 = vadd.f32 %v661_v44, %v651_v26  ;;  %v697_v53 = vmul.f32 %v1015_v25, %v1843_v59  ;;  %v707_v29 = vmul.f32 %v1016_v16, %v1850_v63 }
  0xca   :  { %v840_v55 = vmul.f32 %v832_v20, %v786_v23  ;;  %v894_v37 = vadd.f32 %v886_v62, %v876_v22  ;;  %v725_v58 = vmul.f32 %v1017_v56, %v1853_v28  ;;  %v751_v10 = vmul.f32 %v1015_v25, %v1856_v46 }
  0xcb   :  { %920 = vst [vmem:[#allocation9 + $0xa0] sm:$0xff] %v911_v18  ;;  %v687_v41 = vadd.f32 %v679_v47, %v669_v33  ;;  %v715_v17 = vadd.f32 %v707_v29, %v697_v53  ;;  %v761_v5 = vmul.f32 %v1016_v16, %v1864_v0  ;;  %v779_v1 = vmul.f32 %v1017_v56, %v1867_v60 }
  0xcc   :  { %v848_v61 = vsub.f32 %v740_v48, %v840_v55  ;;  %v797_v52 = vmul.f32 %v1015_v25, %v1870_v35  ;;  %v807_v3 = vmul.f32 %v1016_v16, %v1876_v43  ;;  %v825_v4 = vmul.f32 %v1017_v56, %v1879_v2 }
  0xcd   :  { %v733_v30 = vadd.f32 %v725_v58, %v715_v17  ;;  %v769_v31 = vadd.f32 %v761_v5, %v751_v10  ;;  %v859_v8 = vmul.f32 %v1015_v25, %v1882_v13  ;;  %v869_v34 = vmul.f32 %v1016_v16, %v1889_v9 }
  0xce   :  { %v902_v38 = vadd.f32 %v894_v37, %v848_v61  ;;  %v815_v40 = vadd.f32 %v807_v3, %v797_v52  ;;  %v887_v11 = vmul.f32 %v1017_v56, %v1892_v14  ;;  %v652_v45 = vmul.f32 %v1018_v7, %v1827_v39 }
  0xcf   :  { %v741_v19 = vmul.f32 %v733_v30, %v687_v41  ;;  %v787_v50 = vadd.f32 %v779_v1, %v769_v31  ;;  %v877_v15 = vadd.f32 %v869_v34, %v859_v8  ;;  %v662_v51 = vmul.f32 %v1019_v24, %v1830_v32 }
  0xd0   :  { %v912_v36 = vadd.f32 %v1897_v6, %v902_v38  ;;  %v833_v27 = vadd.f32 %v825_v4, %v815_v40  ;;  %v680_v21 = vmul.f32 %v1020_v54, %v1840_v49  ;;  %v698_v57 = vmul.f32 %v1018_v7, %v1843_v59 }
  0xd1   :  { %v895_v42 = vadd.f32 %v887_v11, %v877_v15  ;;  %v670_v62 = vadd.f32 %v662_v51, %v652_v45  ;;  %v708_v12 = vmul.f32 %v1019_v24, %v1850_v63  ;;  %v726_v39 = vmul.f32 %v1020_v54, %v1853_v28 }
  0xd2   :  { %921 = vst [vmem:[#allocation9 + $0xa8] sm:$0xff] %v912_v36  ;;  %v841_v23 = vmul.f32 %v833_v27, %v787_v50  ;;  %v752_v25 = vmul.f32 %v1018_v7, %v1856_v46  ;;  %v762_v32 = vmul.f32 %v1019_v24, %v1864_v0  ;;  %v780_v26 = vmul.f32 %v1020_v54, %v1867_v60 }
  0xd3   :  { %v688_v16 = vadd.f32 %v680_v21, %v670_v62  ;;  %v716_v44 = vadd.f32 %v708_v12, %v698_v57  ;;  %v798_v49 = vmul.f32 %v1018_v7, %v1870_v35  ;;  %v808_v59 = vmul.f32 %v1019_v24, %v1876_v43 }
  0xd4   :  { %v849_v48 = vsub.f32 %v741_v19, %v841_v23  ;;  %v770_v20 = vadd.f32 %v762_v32, %v752_v25  ;;  %v826_v63 = vmul.f32 %v1020_v54, %v1879_v2  ;;  %v860_v28 = vmul.f32 %v1018_v7, %v1882_v13 }
  0xd5   :  { %v734_v22 = vadd.f32 %v726_v39, %v716_v44  ;;  %v816_v56 = vadd.f32 %v808_v59, %v798_v49  ;;  %v870_v46 = vmul.f32 %v1019_v24, %v1889_v9  ;;  %v888_v0 = vmul.f32 %v1020_v54, %v1892_v14 }
  0xd6   :  { %v903_v47 = vadd.f32 %v895_v42, %v849_v48  ;;  %v788_v60 = vadd.f32 %v780_v26, %v770_v20 }
  0xd7   :  { %v742_v18 = vmul.f32 %v734_v22, %v688_v16  ;;  %v834_v33 = vadd.f32 %v826_v63, %v816_v56  ;;  %v878_v53 = vadd.f32 %v870_v46, %v860_v28 }
  0xd8   :  { %v913_v35 = vadd.f32 %v1897_v6, %v903_v47 }
  0xd9   :  { %v842_v43 = vmul.f32 %v834_v33, %v788_v60  ;;  %v896_v29 = vadd.f32 %v888_v0, %v878_v53 }
  0xda   :  { %922 = vst [vmem:[#allocation9 + $0xb0] sm:$0xff] %v913_v35 }
  0xdb   :  { %v850_v55 = vsub.f32 %v742_v18, %v842_v43 }
  0xdd   :  { %v904_v2 = vadd.f32 %v896_v29, %v850_v55 }
  0xdf   :  { %v914_v13 = vadd.f32 %v1897_v6, %v904_v2 }
  0xe1   :  { %923 = vst [vmem:[#allocation9 + $0xb8] sm:$0xff] %v914_v13 }
  0xe2   :  { %936 = dma.vmem_to_hbm [thread:$0]  %s929_s18, 3072, %s931_s21, [#allocation4], %s1104_s25, %s1104_s25, %s1105_s0  }
  0xe3   :  { %1099 = dma.done.wait [#allocation4], 3072  }
  0xe4   :  { %1100 = vsyncadd [#allocation4], 4294964224 }
  0xe5   :  { %941 = vsyncpa [#allocation3], 1 }
  0xe6   :  { %942 = vsyncpa [#allocation4], 1 }
  0xe7   :  { %943 = vsyncpa [#allocation5], 1 }
  0xe8   :  { %944 = vsyncpa [#allocation7], 1 }

</bundles_post_ra>
